<compile_context>
chip_gen: v6e
topology: v6e:2x2x1
jax: 0.10.0
libtpu: 0.0.40
codegen_flags: <defaults>
</compile_context>

<pallas_src>
import math

import jax
import jax.numpy as jnp
from jax import lax
from jax.experimental import pallas as pl
from jax.experimental.pallas import tpu as pltpu


# ----------------------------- model config --------------------------------

BATCH = 2
IN_CHANNELS = 4        # backbone.num_channels (stand-in)
H = W = 16
S = H * W              # 256 spatial positions -> lane axis
HIDDEN = 32            # transformer.d_model
NUM_QUERIES = 8
NUM_OBJ_CLASSES = 8    # gen setting -> object head has NUM_OBJ_CLASSES + 1 outputs
NUM_HOI = 600          # use_fag_setting=False -> verb head is Linear(hidden, 600)
NUM_DEC_LAYERS = 2     # stand-in decoder depth

_OBJ_OUT = NUM_OBJ_CLASSES + 1
HOI_PAD = ((NUM_HOI + 127) // 128) * 128   # 640 -> lane-dense (unmasked) stores


# ----------------------------- fused Pallas kernel --------------------------

def _hoitr_fused_kernel(
    src_ref, pos_ref, pw_ref, pb_ref, qe_ref,
    d1w_ref, d1b_ref, d2w_ref, d2b_ref,
    hw0_ref, hb0_ref, hw1_ref, hb1_ref, hw2_ref, hb2_ref,
    ow0_ref, ob0_ref, ow1_ref, ob1_ref, ow2_ref, ob2_ref,
    ocw_ref, ocb_ref, vcw_ref, vcb_ref,
    sub_ref, objbox_ref, objcls_ref, hoi_ref,
):
    f32 = jnp.float32

    # --- input_proj: 1x1 conv as (D, C) @ (C, S); output is lane-dense on S ---
    src = src_ref[0]                                                   # (C, S)
    mem = jnp.dot(pw_ref[...], src, preferred_element_type=f32)       # (D, S)
    mem = mem + pb_ref[...] + pos_ref[...]                             # bias + pos

    # --- decoder stand-in: cross-attention + FFN layers ---
    # TODO(synk): the real DETR transformer (multi-head attn, layernorm, dropout,
    # encoder) is an external module; this minimal stand-in keeps the same hs flow.
    query = qe_ref[...]                                                # (Q, D)
    tgt = jnp.zeros(query.shape, f32)
    scale = 1.0 / math.sqrt(HIDDEN)
    for l in range(NUM_DEC_LAYERS):
        q = tgt + query                                                # (Q, D)
        s = jnp.dot(q, mem, preferred_element_type=f32) * scale        # (Q, S)
        s = s - jnp.max(s, axis=-1, keepdims=True)
        p = jnp.exp(s)
        denom = jnp.sum(p, axis=-1, keepdims=True)
        p = p * pl.reciprocal(denom, approx=True)
        # contract over S on both operands -> no k.T / v.T materialization.
        attn = lax.dot_general(p, mem, (((1,), (1,)), ((), ())),
                               preferred_element_type=f32)             # (Q, D)
        tgt = tgt + attn
        h = jnp.maximum(
            jnp.dot(tgt, d1w_ref[l], preferred_element_type=f32) + d1b_ref[l], 0.0)
        h = jnp.dot(h, d2w_ref[l], preferred_element_type=f32) + d2b_ref[l]
        tgt = tgt + h

    # --- prediction heads ---
    # aux_loss=False: only the last decoder layer's hs reaches the outputs, so the
    # heads are evaluated on that layer only (identical results, less work).
    def _mlp3_sigmoid(x, w0, b0, w1, b1, w2, b2):
        h = jnp.maximum(jnp.dot(x, w0, preferred_element_type=f32) + b0, 0.0)
        h = jnp.maximum(jnp.dot(h, w1, preferred_element_type=f32) + b1, 0.0)
        return jax.nn.sigmoid(jnp.dot(h, w2, preferred_element_type=f32) + b2)

    sub_boxes = _mlp3_sigmoid(tgt, hw0_ref[...], hb0_ref[...], hw1_ref[...],
                              hb1_ref[...], hw2_ref[...], hb2_ref[...])   # (Q, 4)
    obj_boxes = _mlp3_sigmoid(tgt, ow0_ref[...], ob0_ref[...], ow1_ref[...],
                              ob1_ref[...], ow2_ref[...], ob2_ref[...])   # (Q, 4)
    obj_logits = jnp.dot(tgt, ocw_ref[...], preferred_element_type=f32) + ocb_ref[...]
    hoi_logits = jnp.dot(tgt, vcw_ref[...], preferred_element_type=f32) + vcb_ref[...]

    sub_ref[0] = sub_boxes.astype(sub_ref.dtype)
    objbox_ref[0] = obj_boxes.astype(objbox_ref.dtype)
    objcls_ref[0] = obj_logits.astype(objcls_ref.dtype)
    hoi_ref[0] = hoi_logits.astype(hoi_ref.dtype)                      # (Q, 640) padded


# ----------------------------- params ---------------------------------------

def _init(key, shape, scale=0.05):
    return scale * jax.random.normal(key, shape, jnp.float32)


def init_params(key):
    keys = iter(jax.random.split(key, 64))
    p = {}
    p["query_embed"] = _init(next(keys), (NUM_QUERIES, HIDDEN))
    # input_proj: Conv2d(C, hidden, kernel_size=1) stored as (hidden, C) matmul weight.
    p["input_proj_w"] = _init(next(keys), (HIDDEN, IN_CHANNELS))
    p["input_proj_b"] = _init(next(keys), (HIDDEN,))
    # transformer-decoder stand-in FFN weights, stacked over layers.
    p["dec_ffn1_w"] = _init(next(keys), (NUM_DEC_LAYERS, HIDDEN, HIDDEN))
    p["dec_ffn1_b"] = _init(next(keys), (NUM_DEC_LAYERS, 1, HIDDEN))
    p["dec_ffn2_w"] = _init(next(keys), (NUM_DEC_LAYERS, HIDDEN, HIDDEN))
    p["dec_ffn2_b"] = _init(next(keys), (NUM_DEC_LAYERS, 1, HIDDEN))
    # MLP(hidden, hidden, 4, 3) box heads.
    for prefix in ("human_box", "object_box"):
        p[f"{prefix}_w0"] = _init(next(keys), (HIDDEN, HIDDEN))
        p[f"{prefix}_b0"] = _init(next(keys), (HIDDEN,))
        p[f"{prefix}_w1"] = _init(next(keys), (HIDDEN, HIDDEN))
        p[f"{prefix}_b1"] = _init(next(keys), (HIDDEN,))
        p[f"{prefix}_w2"] = _init(next(keys), (HIDDEN, 4))
        p[f"{prefix}_b2"] = _init(next(keys), (4,))
    # classification heads.
    p["obj_cls_w"] = _init(next(keys), (HIDDEN, _OBJ_OUT))
    p["obj_cls_b"] = _init(next(keys), (_OBJ_OUT,))
    p["verb_cls_w"] = _init(next(keys), (HIDDEN, NUM_HOI))
    p["verb_cls_b"] = _init(next(keys), (NUM_HOI,))
    return p


# ----------------------------- forward pass ---------------------------------

def _const_spec(shape):
    zeros = (0,) * len(shape)
    return pl.BlockSpec(shape, lambda b, _z=zeros: _z)


def hoitr_forward(params, x):
    """x: NCHW image/feature tensor of shape (B, C, H, W), float32."""
    B, C, Himg, Wimg = x.shape
    s_len = Himg * Wimg

    # TODO(synk): external CNN backbone + NestedTensor mask handling are not part of
    # this module; the input tensor is used directly as the last backbone feature map.
    # NCHW kept as-is: (B, C, H*W) puts S on the lane axis -> no transpose needed.
    src = x.reshape(B, C, s_len)

    # TODO(synk): sine positional embedding of the external backbone replaced by a
    # deterministic sinusoidal stand-in precomputed in (D, S) layout.
    pos_s = jnp.arange(s_len, dtype=jnp.float32)[None, :]
    pos_d = jnp.arange(HIDDEN, dtype=jnp.float32)[:, None]
    pos = jnp.sin(pos_s / (10000.0 ** (pos_d / HIDDEN)))               # (D, S)

    # Pad the verb/HOI head to a multiple of 128 lanes (zeros are sliced off below).
    vc_w = jnp.pad(params["verb_cls_w"], ((0, 0), (0, HOI_PAD - NUM_HOI)))
    vc_b = jnp.pad(params["verb_cls_b"], (0, HOI_PAD - NUM_HOI)).reshape(1, HOI_PAD)

    inputs = [
        src, pos,
        params["input_proj_w"], params["input_proj_b"].reshape(HIDDEN, 1),
        params["query_embed"],
        params["dec_ffn1_w"], params["dec_ffn1_b"],
        params["dec_ffn2_w"], params["dec_ffn2_b"],
        params["human_box_w0"], params["human_box_b0"].reshape(1, HIDDEN),
        params["human_box_w1"], params["human_box_b1"].reshape(1, HIDDEN),
        params["human_box_w2"], params["human_box_b2"].reshape(1, 4),
        params["object_box_w0"], params["object_box_b0"].reshape(1, HIDDEN),
        params["object_box_w1"], params["object_box_b1"].reshape(1, HIDDEN),
        params["object_box_w2"], params["object_box_b2"].reshape(1, 4),
        params["obj_cls_w"], params["obj_cls_b"].reshape(1, _OBJ_OUT),
        vc_w, vc_b,
    ]

    in_specs = [pl.BlockSpec((1, C, s_len), lambda b: (b, 0, 0))]
    in_specs += [_const_spec(a.shape) for a in inputs[1:]]

    sub, objbox, objcls, hoi = pl.pallas_call(
        _hoitr_fused_kernel,
        out_shape=(
            jax.ShapeDtypeStruct((B, NUM_QUERIES, 4), jnp.float32),
            jax.ShapeDtypeStruct((B, NUM_QUERIES, 4), jnp.float32),
            jax.ShapeDtypeStruct((B, NUM_QUERIES, _OBJ_OUT), jnp.float32),
            jax.ShapeDtypeStruct((B, NUM_QUERIES, HOI_PAD), jnp.float32),
        ),
        grid=(B,),
        in_specs=in_specs,
        out_specs=(
            pl.BlockSpec((1, NUM_QUERIES, 4), lambda b: (b, 0, 0)),
            pl.BlockSpec((1, NUM_QUERIES, 4), lambda b: (b, 0, 0)),
            pl.BlockSpec((1, NUM_QUERIES, _OBJ_OUT), lambda b: (b, 0, 0)),
            pl.BlockSpec((1, NUM_QUERIES, HOI_PAD), lambda b: (b, 0, 0)),
        ),
        compiler_params=pltpu.CompilerParams(
            dimension_semantics=("parallel",)),
    )(*inputs)

    return {
        "pred_sub_boxes": sub,
        "pred_obj_logits": objcls,
        "pred_obj_boxes": objbox,
        "pred_hoi_logits": hoi[..., :NUM_HOI],   # use_fag_setting=False -> 'pred_hoi_logits'
    }
    # aux_loss=False, sentence_branch=False (defaults) -> no extra outputs.


# ----------------------------- main -----------------------------------------

if __name__ == "__main__":
    key = jax.random.PRNGKey(0)
    k_x, k_p = jax.random.split(key)
    x = jax.random.normal(k_x, (BATCH, IN_CHANNELS, H, W), jnp.float32)
    params = init_params(k_p)

    out = jax.jit(hoitr_forward)(params, x)
    out = jax.block_until_ready(out)

    assert out["pred_sub_boxes"].shape == (BATCH, NUM_QUERIES, 4)
    assert out["pred_obj_boxes"].shape == (BATCH, NUM_QUERIES, 4)
    assert out["pred_obj_logits"].shape == (BATCH, NUM_QUERIES, NUM_OBJ_CLASSES + 1)
    assert out["pred_hoi_logits"].shape == (BATCH, NUM_QUERIES, NUM_HOI)
    print("KERNEL_OK")
</pallas_src>

<mosaic_0001>
module attributes {stable_mosaic.version = 11 : i64} {
  func.func @_hoitr_fused_kernel(%arg0: i32, %arg1: memref<1x4x256xf32, #tpu.memory_space<vmem>>, %arg2: memref<32x256xf32, #tpu.memory_space<vmem>>, %arg3: memref<32x4xf32, #tpu.memory_space<vmem>>, %arg4: memref<32x1xf32, #tpu.memory_space<vmem>>, %arg5: memref<8x32xf32, #tpu.memory_space<vmem>>, %arg6: memref<2x32x32xf32, #tpu.memory_space<vmem>>, %arg7: memref<2x1x32xf32, #tpu.memory_space<vmem>>, %arg8: memref<2x32x32xf32, #tpu.memory_space<vmem>>, %arg9: memref<2x1x32xf32, #tpu.memory_space<vmem>>, %arg10: memref<32x32xf32, #tpu.memory_space<vmem>>, %arg11: memref<1x32xf32, #tpu.memory_space<vmem>>, %arg12: memref<32x32xf32, #tpu.memory_space<vmem>>, %arg13: memref<1x32xf32, #tpu.memory_space<vmem>>, %arg14: memref<32x4xf32, #tpu.memory_space<vmem>>, %arg15: memref<1x4xf32, #tpu.memory_space<vmem>>, %arg16: memref<32x32xf32, #tpu.memory_space<vmem>>, %arg17: memref<1x32xf32, #tpu.memory_space<vmem>>, %arg18: memref<32x32xf32, #tpu.memory_space<vmem>>, %arg19: memref<1x32xf32, #tpu.memory_space<vmem>>, %arg20: memref<32x4xf32, #tpu.memory_space<vmem>>, %arg21: memref<1x4xf32, #tpu.memory_space<vmem>>, %arg22: memref<32x9xf32, #tpu.memory_space<vmem>>, %arg23: memref<1x9xf32, #tpu.memory_space<vmem>>, %arg24: memref<32x640xf32, #tpu.memory_space<vmem>>, %arg25: memref<1x640xf32, #tpu.memory_space<vmem>>, %arg26: memref<1x8x4xf32, #tpu.memory_space<vmem>>, %arg27: memref<1x8x4xf32, #tpu.memory_space<vmem>>, %arg28: memref<1x8x9xf32, #tpu.memory_space<vmem>>, %arg29: memref<1x8x640xf32, #tpu.memory_space<vmem>>) attributes {dimension_semantics = [#tpu.dimension_semantics<parallel>], iteration_bounds = array<i64: 2>, scalar_prefetch = 0 : i64, scratch_operands = 0 : i64, tpu.core_type = #tpu.core_type<tc>, window_params = [{transform_indices = @transform_0, window_bounds = array<i64: 1, 4, 256>}, {pipeline_mode = #tpu.pipeline_mode<synchronous>, transform_indices = @transform_1, window_bounds = array<i64: 32, 256>}, {pipeline_mode = #tpu.pipeline_mode<synchronous>, transform_indices = @transform_2, window_bounds = array<i64: 32, 4>}, {pipeline_mode = #tpu.pipeline_mode<synchronous>, transform_indices = @transform_3, window_bounds = array<i64: 32, 1>}, {pipeline_mode = #tpu.pipeline_mode<synchronous>, transform_indices = @transform_4, window_bounds = array<i64: 8, 32>}, {pipeline_mode = #tpu.pipeline_mode<synchronous>, transform_indices = @transform_5, window_bounds = array<i64: 2, 32, 32>}, {pipeline_mode = #tpu.pipeline_mode<synchronous>, transform_indices = @transform_6, window_bounds = array<i64: 2, 1, 32>}, {pipeline_mode = #tpu.pipeline_mode<synchronous>, transform_indices = @transform_7, window_bounds = array<i64: 2, 32, 32>}, {pipeline_mode = #tpu.pipeline_mode<synchronous>, transform_indices = @transform_8, window_bounds = array<i64: 2, 1, 32>}, {pipeline_mode = #tpu.pipeline_mode<synchronous>, transform_indices = @transform_9, window_bounds = array<i64: 32, 32>}, {pipeline_mode = #tpu.pipeline_mode<synchronous>, transform_indices = @transform_10, window_bounds = array<i64: 1, 32>}, {pipeline_mode = #tpu.pipeline_mode<synchronous>, transform_indices = @transform_11, window_bounds = array<i64: 32, 32>}, {pipeline_mode = #tpu.pipeline_mode<synchronous>, transform_indices = @transform_12, window_bounds = array<i64: 1, 32>}, {pipeline_mode = #tpu.pipeline_mode<synchronous>, transform_indices = @transform_13, window_bounds = array<i64: 32, 4>}, {pipeline_mode = #tpu.pipeline_mode<synchronous>, transform_indices = @transform_14, window_bounds = array<i64: 1, 4>}, {pipeline_mode = #tpu.pipeline_mode<synchronous>, transform_indices = @transform_15, window_bounds = array<i64: 32, 32>}, {pipeline_mode = #tpu.pipeline_mode<synchronous>, transform_indices = @transform_16, window_bounds = array<i64: 1, 32>}, {pipeline_mode = #tpu.pipeline_mode<synchronous>, transform_indices = @transform_17, window_bounds = array<i64: 32, 32>}, {pipeline_mode = #tpu.pipeline_mode<synchronous>, transform_indices = @transform_18, window_bounds = array<i64: 1, 32>}, {pipeline_mode = #tpu.pipeline_mode<synchronous>, transform_indices = @transform_19, window_bounds = array<i64: 32, 4>}, {pipeline_mode = #tpu.pipeline_mode<synchronous>, transform_indices = @transform_20, window_bounds = array<i64: 1, 4>}, {pipeline_mode = #tpu.pipeline_mode<synchronous>, transform_indices = @transform_21, window_bounds = array<i64: 32, 9>}, {pipeline_mode = #tpu.pipeline_mode<synchronous>, transform_indices = @transform_22, window_bounds = array<i64: 1, 9>}, {pipeline_mode = #tpu.pipeline_mode<synchronous>, transform_indices = @transform_23, window_bounds = array<i64: 32, 640>}, {pipeline_mode = #tpu.pipeline_mode<synchronous>, transform_indices = @transform_24, window_bounds = array<i64: 1, 640>}, {transform_indices = @transform_25, window_bounds = array<i64: 1, 8, 4>}, {transform_indices = @transform_26, window_bounds = array<i64: 1, 8, 4>}, {transform_indices = @transform_27, window_bounds = array<i64: 1, 8, 9>}, {transform_indices = @transform_28, window_bounds = array<i64: 1, 8, 640>}]} {
    %c0 = arith.constant 0 : index
    %c0_0 = arith.constant 0 : index
    %c0_1 = arith.constant 0 : index
    %0 = vector.load %arg1[%c0, %c0_0, %c0_1] : memref<1x4x256xf32, #tpu.memory_space<vmem>>, vector<1x4x256xf32>
    %1 = vector.shape_cast %0 : vector<1x4x256xf32> to vector<4x256xf32>
    %c0_2 = arith.constant 0 : index
    %c0_3 = arith.constant 0 : index
    %2 = vector.load %arg3[%c0_2, %c0_3] : memref<32x4xf32, #tpu.memory_space<vmem>>, vector<32x4xf32>
    %cst = arith.constant dense<0.000000e+00> : vector<32x256xf32>
    %3 = tpu.matmul %2, %1, %cst {dimension_numbers = #tpu.dot_dimension_numbers<[1], [0], [0], [1], [0, 0, 1, 1], [], []>} : vector<32x4xf32>, vector<4x256xf32>, vector<32x256xf32> -> vector<32x256xf32>
    %c0_4 = arith.constant 0 : index
    %c0_5 = arith.constant 0 : index
    %4 = vector.load %arg4[%c0_4, %c0_5] : memref<32x1xf32, #tpu.memory_space<vmem>>, vector<32x1xf32>
    %5 = vector.broadcast %4 : vector<32x1xf32> to vector<32x256xf32>
    %6 = arith.addf %3, %5 : vector<32x256xf32>
    %c0_6 = arith.constant 0 : index
    %c0_7 = arith.constant 0 : index
    %7 = vector.load %arg2[%c0_6, %c0_7] : memref<32x256xf32, #tpu.memory_space<vmem>>, vector<32x256xf32>
    %8 = arith.addf %6, %7 : vector<32x256xf32>
    %c0_8 = arith.constant 0 : index
    %c0_9 = arith.constant 0 : index
    %9 = vector.load %arg5[%c0_8, %c0_9] : memref<8x32xf32, #tpu.memory_space<vmem>>, vector<8x32xf32>
    %cst_10 = arith.constant 0.000000e+00 : f32
    %10 = vector.broadcast %cst_10 : f32 to vector<8x32xf32>
    %11 = arith.addf %10, %9 : vector<8x32xf32>
    %cst_11 = arith.constant dense<0.000000e+00> : vector<8x256xf32>
    %12 = tpu.matmul %11, %8, %cst_11 {dimension_numbers = #tpu.dot_dimension_numbers<[1], [0], [0], [1], [0, 0, 1, 1], [], []>} : vector<8x32xf32>, vector<32x256xf32>, vector<8x256xf32> -> vector<8x256xf32>
    %cst_12 = arith.constant 0.176776692 : f32
    %13 = vector.broadcast %cst_12 : f32 to vector<8x256xf32>
    %14 = arith.mulf %12, %13 : vector<8x256xf32>
    %cst_13 = arith.constant dense<0xFF800000> : vector<8xf32>
    %15 = vector.multi_reduction <maximumf>, %14, %cst_13 [1] : vector<8x256xf32> to vector<8xf32>
    %16 = vector.shape_cast %15 : vector<8xf32> to vector<8x1xf32>
    %17 = vector.broadcast %16 : vector<8x1xf32> to vector<8x256xf32>
    %18 = arith.subf %14, %17 : vector<8x256xf32>
    %19 = math.exp %18 : vector<8x256xf32>
    %cst_14 = arith.constant dense<0.000000e+00> : vector<8xf32>
    %20 = vector.multi_reduction <add>, %19, %cst_14 [1] : vector<8x256xf32> to vector<8xf32>
    %21 = vector.shape_cast %20 : vector<8xf32> to vector<8x1xf32>
    %22 = tpu.reciprocal %21 {approx = true} : vector<8x1xf32> -> vector<8x1xf32>
    %23 = vector.broadcast %22 : vector<8x1xf32> to vector<8x256xf32>
    %24 = arith.mulf %19, %23 : vector<8x256xf32>
    %cst_15 = arith.constant dense<0.000000e+00> : vector<8x32xf32>
    %25 = tpu.matmul %24, %8, %cst_15 {dimension_numbers = #tpu.dot_dimension_numbers<[1], [1], [0], [0], [0, 0, 1, 0], [], []>} : vector<8x256xf32>, vector<32x256xf32>, vector<8x32xf32> -> vector<8x32xf32>
    %26 = arith.addf %10, %25 : vector<8x32xf32>
    %c0_16 = arith.constant 0 : index
    %c0_17 = arith.constant 0 : index
    %c0_18 = arith.constant 0 : index
    %27 = vector.load %arg6[%c0_16, %c0_17, %c0_18] : memref<2x32x32xf32, #tpu.memory_space<vmem>>, vector<1x32x32xf32>
    %28 = vector.shape_cast %27 : vector<1x32x32xf32> to vector<32x32xf32>
    %cst_19 = arith.constant dense<0.000000e+00> : vector<8x32xf32>
    %29 = tpu.matmul %26, %28, %cst_19 {dimension_numbers = #tpu.dot_dimension_numbers<[1], [0], [0], [1], [0, 0, 1, 1], [], []>} : vector<8x32xf32>, vector<32x32xf32>, vector<8x32xf32> -> vector<8x32xf32>
    %c0_20 = arith.constant 0 : index
    %c0_21 = arith.constant 0 : index
    %c0_22 = arith.constant 0 : index
    %30 = vector.load %arg7[%c0_20, %c0_21, %c0_22] : memref<2x1x32xf32, #tpu.memory_space<vmem>>, vector<1x1x32xf32>
    %31 = vector.shape_cast %30 : vector<1x1x32xf32> to vector<1x32xf32>
    %32 = vector.broadcast %31 : vector<1x32xf32> to vector<8x32xf32>
    %33 = arith.addf %29, %32 : vector<8x32xf32>
    %cst_23 = arith.constant 0.000000e+00 : f32
    %34 = vector.broadcast %cst_23 : f32 to vector<8x32xf32>
    %35 = arith.maximumf %33, %34 : vector<8x32xf32>
    %c0_24 = arith.constant 0 : index
    %c0_25 = arith.constant 0 : index
    %c0_26 = arith.constant 0 : index
    %36 = vector.load %arg8[%c0_24, %c0_25, %c0_26] : memref<2x32x32xf32, #tpu.memory_space<vmem>>, vector<1x32x32xf32>
    %37 = vector.shape_cast %36 : vector<1x32x32xf32> to vector<32x32xf32>
    %cst_27 = arith.constant dense<0.000000e+00> : vector<8x32xf32>
    %38 = tpu.matmul %35, %37, %cst_27 {dimension_numbers = #tpu.dot_dimension_numbers<[1], [0], [0], [1], [0, 0, 1, 1], [], []>} : vector<8x32xf32>, vector<32x32xf32>, vector<8x32xf32> -> vector<8x32xf32>
    %c0_28 = arith.constant 0 : index
    %c0_29 = arith.constant 0 : index
    %c0_30 = arith.constant 0 : index
    %39 = vector.load %arg9[%c0_28, %c0_29, %c0_30] : memref<2x1x32xf32, #tpu.memory_space<vmem>>, vector<1x1x32xf32>
    %40 = vector.shape_cast %39 : vector<1x1x32xf32> to vector<1x32xf32>
    %41 = vector.broadcast %40 : vector<1x32xf32> to vector<8x32xf32>
    %42 = arith.addf %38, %41 : vector<8x32xf32>
    %43 = arith.addf %26, %42 : vector<8x32xf32>
    %44 = arith.addf %43, %9 : vector<8x32xf32>
    %cst_31 = arith.constant dense<0.000000e+00> : vector<8x256xf32>
    %45 = tpu.matmul %44, %8, %cst_31 {dimension_numbers = #tpu.dot_dimension_numbers<[1], [0], [0], [1], [0, 0, 1, 1], [], []>} : vector<8x32xf32>, vector<32x256xf32>, vector<8x256xf32> -> vector<8x256xf32>
    %cst_32 = arith.constant 0.176776692 : f32
    %46 = vector.broadcast %cst_32 : f32 to vector<8x256xf32>
    %47 = arith.mulf %45, %46 : vector<8x256xf32>
    %cst_33 = arith.constant dense<0xFF800000> : vector<8xf32>
    %48 = vector.multi_reduction <maximumf>, %47, %cst_33 [1] : vector<8x256xf32> to vector<8xf32>
    %49 = vector.shape_cast %48 : vector<8xf32> to vector<8x1xf32>
    %50 = vector.broadcast %49 : vector<8x1xf32> to vector<8x256xf32>
    %51 = arith.subf %47, %50 : vector<8x256xf32>
    %52 = math.exp %51 : vector<8x256xf32>
    %cst_34 = arith.constant dense<0.000000e+00> : vector<8xf32>
    %53 = vector.multi_reduction <add>, %52, %cst_34 [1] : vector<8x256xf32> to vector<8xf32>
    %54 = vector.shape_cast %53 : vector<8xf32> to vector<8x1xf32>
    %55 = tpu.reciprocal %54 {approx = true} : vector<8x1xf32> -> vector<8x1xf32>
    %56 = vector.broadcast %55 : vector<8x1xf32> to vector<8x256xf32>
    %57 = arith.mulf %52, %56 : vector<8x256xf32>
    %cst_35 = arith.constant dense<0.000000e+00> : vector<8x32xf32>
    %58 = tpu.matmul %57, %8, %cst_35 {dimension_numbers = #tpu.dot_dimension_numbers<[1], [1], [0], [0], [0, 0, 1, 0], [], []>} : vector<8x256xf32>, vector<32x256xf32>, vector<8x32xf32> -> vector<8x32xf32>
    %59 = arith.addf %43, %58 : vector<8x32xf32>
    %c1 = arith.constant 1 : index
    %c0_36 = arith.constant 0 : index
    %c0_37 = arith.constant 0 : index
    %60 = vector.load %arg6[%c1, %c0_36, %c0_37] : memref<2x32x32xf32, #tpu.memory_space<vmem>>, vector<1x32x32xf32>
    %61 = vector.shape_cast %60 : vector<1x32x32xf32> to vector<32x32xf32>
    %cst_38 = arith.constant dense<0.000000e+00> : vector<8x32xf32>
    %62 = tpu.matmul %59, %61, %cst_38 {dimension_numbers = #tpu.dot_dimension_numbers<[1], [0], [0], [1], [0, 0, 1, 1], [], []>} : vector<8x32xf32>, vector<32x32xf32>, vector<8x32xf32> -> vector<8x32xf32>
    %c1_39 = arith.constant 1 : index
    %c0_40 = arith.constant 0 : index
    %c0_41 = arith.constant 0 : index
    %63 = vector.load %arg7[%c1_39, %c0_40, %c0_41] : memref<2x1x32xf32, #tpu.memory_space<vmem>>, vector<1x1x32xf32>
    %64 = vector.shape_cast %63 : vector<1x1x32xf32> to vector<1x32xf32>
    %65 = vector.broadcast %64 : vector<1x32xf32> to vector<8x32xf32>
    %66 = arith.addf %62, %65 : vector<8x32xf32>
    %cst_42 = arith.constant 0.000000e+00 : f32
    %67 = vector.broadcast %cst_42 : f32 to vector<8x32xf32>
    %68 = arith.maximumf %66, %67 : vector<8x32xf32>
    %c1_43 = arith.constant 1 : index
    %c0_44 = arith.constant 0 : index
    %c0_45 = arith.constant 0 : index
    %69 = vector.load %arg8[%c1_43, %c0_44, %c0_45] : memref<2x32x32xf32, #tpu.memory_space<vmem>>, vector<1x32x32xf32>
    %70 = vector.shape_cast %69 : vector<1x32x32xf32> to vector<32x32xf32>
    %cst_46 = arith.constant dense<0.000000e+00> : vector<8x32xf32>
    %71 = tpu.matmul %68, %70, %cst_46 {dimension_numbers = #tpu.dot_dimension_numbers<[1], [0], [0], [1], [0, 0, 1, 1], [], []>} : vector<8x32xf32>, vector<32x32xf32>, vector<8x32xf32> -> vector<8x32xf32>
    %c1_47 = arith.constant 1 : index
    %c0_48 = arith.constant 0 : index
    %c0_49 = arith.constant 0 : index
    %72 = vector.load %arg9[%c1_47, %c0_48, %c0_49] : memref<2x1x32xf32, #tpu.memory_space<vmem>>, vector<1x1x32xf32>
    %73 = vector.shape_cast %72 : vector<1x1x32xf32> to vector<1x32xf32>
    %74 = vector.broadcast %73 : vector<1x32xf32> to vector<8x32xf32>
    %75 = arith.addf %71, %74 : vector<8x32xf32>
    %76 = arith.addf %59, %75 : vector<8x32xf32>
    %c0_50 = arith.constant 0 : index
    %c0_51 = arith.constant 0 : index
    %77 = vector.load %arg10[%c0_50, %c0_51] : memref<32x32xf32, #tpu.memory_space<vmem>>, vector<32x32xf32>
    %c0_52 = arith.constant 0 : index
    %c0_53 = arith.constant 0 : index
    %78 = vector.load %arg11[%c0_52, %c0_53] : memref<1x32xf32, #tpu.memory_space<vmem>>, vector<1x32xf32>
    %c0_54 = arith.constant 0 : index
    %c0_55 = arith.constant 0 : index
    %79 = vector.load %arg12[%c0_54, %c0_55] : memref<32x32xf32, #tpu.memory_space<vmem>>, vector<32x32xf32>
    %c0_56 = arith.constant 0 : index
    %c0_57 = arith.constant 0 : index
    %80 = vector.load %arg13[%c0_56, %c0_57] : memref<1x32xf32, #tpu.memory_space<vmem>>, vector<1x32xf32>
    %c0_58 = arith.constant 0 : index
    %c0_59 = arith.constant 0 : index
    %81 = vector.load %arg14[%c0_58, %c0_59] : memref<32x4xf32, #tpu.memory_space<vmem>>, vector<32x4xf32>
    %c0_60 = arith.constant 0 : index
    %c0_61 = arith.constant 0 : index
    %82 = vector.load %arg15[%c0_60, %c0_61] : memref<1x4xf32, #tpu.memory_space<vmem>>, vector<1x4xf32>
    %cst_62 = arith.constant dense<0.000000e+00> : vector<8x32xf32>
    %83 = tpu.matmul %76, %77, %cst_62 {dimension_numbers = #tpu.dot_dimension_numbers<[1], [0], [0], [1], [0, 0, 1, 1], [], []>} : vector<8x32xf32>, vector<32x32xf32>, vector<8x32xf32> -> vector<8x32xf32>
    %84 = vector.broadcast %78 : vector<1x32xf32> to vector<8x32xf32>
    %85 = arith.addf %83, %84 : vector<8x32xf32>
    %cst_63 = arith.constant 0.000000e+00 : f32
    %86 = vector.broadcast %cst_63 : f32 to vector<8x32xf32>
    %87 = arith.maximumf %85, %86 : vector<8x32xf32>
    %cst_64 = arith.constant dense<0.000000e+00> : vector<8x32xf32>
    %88 = tpu.matmul %87, %79, %cst_64 {dimension_numbers = #tpu.dot_dimension_numbers<[1], [0], [0], [1], [0, 0, 1, 1], [], []>} : vector<8x32xf32>, vector<32x32xf32>, vector<8x32xf32> -> vector<8x32xf32>
    %89 = vector.broadcast %80 : vector<1x32xf32> to vector<8x32xf32>
    %90 = arith.addf %88, %89 : vector<8x32xf32>
    %cst_65 = arith.constant 0.000000e+00 : f32
    %91 = vector.broadcast %cst_65 : f32 to vector<8x32xf32>
    %92 = arith.maximumf %90, %91 : vector<8x32xf32>
    %cst_66 = arith.constant dense<0.000000e+00> : vector<8x4xf32>
    %93 = tpu.matmul %92, %81, %cst_66 {dimension_numbers = #tpu.dot_dimension_numbers<[1], [0], [0], [1], [0, 0, 1, 1], [], []>} : vector<8x32xf32>, vector<32x4xf32>, vector<8x4xf32> -> vector<8x4xf32>
    %94 = vector.broadcast %82 : vector<1x4xf32> to vector<8x4xf32>
    %95 = arith.addf %93, %94 : vector<8x4xf32>
    %96 = arith.negf %95 : vector<8x4xf32>
    %97 = math.exp %96 : vector<8x4xf32>
    %cst_67 = arith.constant 1.000000e+00 : f32
    %98 = vector.broadcast %cst_67 : f32 to vector<8x4xf32>
    %99 = arith.addf %98, %97 : vector<8x4xf32>
    %100 = arith.divf %98, %99 : vector<8x4xf32>
    %c0_68 = arith.constant 0 : index
    %c0_69 = arith.constant 0 : index
    %101 = vector.load %arg16[%c0_68, %c0_69] : memref<32x32xf32, #tpu.memory_space<vmem>>, vector<32x32xf32>
    %c0_70 = arith.constant 0 : index
    %c0_71 = arith.constant 0 : index
    %102 = vector.load %arg17[%c0_70, %c0_71] : memref<1x32xf32, #tpu.memory_space<vmem>>, vector<1x32xf32>
    %c0_72 = arith.constant 0 : index
    %c0_73 = arith.constant 0 : index
    %103 = vector.load %arg18[%c0_72, %c0_73] : memref<32x32xf32, #tpu.memory_space<vmem>>, vector<32x32xf32>
    %c0_74 = arith.constant 0 : index
    %c0_75 = arith.constant 0 : index
    %104 = vector.load %arg19[%c0_74, %c0_75] : memref<1x32xf32, #tpu.memory_space<vmem>>, vector<1x32xf32>
    %c0_76 = arith.constant 0 : index
    %c0_77 = arith.constant 0 : index
    %105 = vector.load %arg20[%c0_76, %c0_77] : memref<32x4xf32, #tpu.memory_space<vmem>>, vector<32x4xf32>
    %c0_78 = arith.constant 0 : index
    %c0_79 = arith.constant 0 : index
    %106 = vector.load %arg21[%c0_78, %c0_79] : memref<1x4xf32, #tpu.memory_space<vmem>>, vector<1x4xf32>
    %cst_80 = arith.constant dense<0.000000e+00> : vector<8x32xf32>
    %107 = tpu.matmul %76, %101, %cst_80 {dimension_numbers = #tpu.dot_dimension_numbers<[1], [0], [0], [1], [0, 0, 1, 1], [], []>} : vector<8x32xf32>, vector<32x32xf32>, vector<8x32xf32> -> vector<8x32xf32>
    %108 = vector.broadcast %102 : vector<1x32xf32> to vector<8x32xf32>
    %109 = arith.addf %107, %108 : vector<8x32xf32>
    %cst_81 = arith.constant 0.000000e+00 : f32
    %110 = vector.broadcast %cst_81 : f32 to vector<8x32xf32>
    %111 = arith.maximumf %109, %110 : vector<8x32xf32>
    %cst_82 = arith.constant dense<0.000000e+00> : vector<8x32xf32>
    %112 = tpu.matmul %111, %103, %cst_82 {dimension_numbers = #tpu.dot_dimension_numbers<[1], [0], [0], [1], [0, 0, 1, 1], [], []>} : vector<8x32xf32>, vector<32x32xf32>, vector<8x32xf32> -> vector<8x32xf32>
    %113 = vector.broadcast %104 : vector<1x32xf32> to vector<8x32xf32>
    %114 = arith.addf %112, %113 : vector<8x32xf32>
    %cst_83 = arith.constant 0.000000e+00 : f32
    %115 = vector.broadcast %cst_83 : f32 to vector<8x32xf32>
    %116 = arith.maximumf %114, %115 : vector<8x32xf32>
    %cst_84 = arith.constant dense<0.000000e+00> : vector<8x4xf32>
    %117 = tpu.matmul %116, %105, %cst_84 {dimension_numbers = #tpu.dot_dimension_numbers<[1], [0], [0], [1], [0, 0, 1, 1], [], []>} : vector<8x32xf32>, vector<32x4xf32>, vector<8x4xf32> -> vector<8x4xf32>
    %118 = vector.broadcast %106 : vector<1x4xf32> to vector<8x4xf32>
    %119 = arith.addf %117, %118 : vector<8x4xf32>
    %120 = arith.negf %119 : vector<8x4xf32>
    %121 = math.exp %120 : vector<8x4xf32>
    %cst_85 = arith.constant 1.000000e+00 : f32
    %122 = vector.broadcast %cst_85 : f32 to vector<8x4xf32>
    %123 = arith.addf %122, %121 : vector<8x4xf32>
    %124 = arith.divf %122, %123 : vector<8x4xf32>
    %c0_86 = arith.constant 0 : index
    %c0_87 = arith.constant 0 : index
    %125 = vector.load %arg22[%c0_86, %c0_87] : memref<32x9xf32, #tpu.memory_space<vmem>>, vector<32x9xf32>
    %cst_88 = arith.constant dense<0.000000e+00> : vector<8x9xf32>
    %126 = tpu.matmul %76, %125, %cst_88 {dimension_numbers = #tpu.dot_dimension_numbers<[1], [0], [0], [1], [0, 0, 1, 1], [], []>} : vector<8x32xf32>, vector<32x9xf32>, vector<8x9xf32> -> vector<8x9xf32>
    %c0_89 = arith.constant 0 : index
    %c0_90 = arith.constant 0 : index
    %127 = vector.load %arg23[%c0_89, %c0_90] : memref<1x9xf32, #tpu.memory_space<vmem>>, vector<1x9xf32>
    %128 = vector.broadcast %127 : vector<1x9xf32> to vector<8x9xf32>
    %129 = arith.addf %126, %128 : vector<8x9xf32>
    %c0_91 = arith.constant 0 : index
    %c0_92 = arith.constant 0 : index
    %130 = vector.load %arg24[%c0_91, %c0_92] : memref<32x640xf32, #tpu.memory_space<vmem>>, vector<32x640xf32>
    %cst_93 = arith.constant dense<0.000000e+00> : vector<8x640xf32>
    %131 = tpu.matmul %76, %130, %cst_93 {dimension_numbers = #tpu.dot_dimension_numbers<[1], [0], [0], [1], [0, 0, 1, 1], [], []>} : vector<8x32xf32>, vector<32x640xf32>, vector<8x640xf32> -> vector<8x640xf32>
    %c0_94 = arith.constant 0 : index
    %c0_95 = arith.constant 0 : index
    %132 = vector.load %arg25[%c0_94, %c0_95] : memref<1x640xf32, #tpu.memory_space<vmem>>, vector<1x640xf32>
    %133 = vector.broadcast %132 : vector<1x640xf32> to vector<8x640xf32>
    %134 = arith.addf %131, %133 : vector<8x640xf32>
    %c0_96 = arith.constant 0 : index
    %c0_97 = arith.constant 0 : index
    %c0_98 = arith.constant 0 : index
    %135 = vector.load %arg26[%c0_96, %c0_97, %c0_98] : memref<1x8x4xf32, #tpu.memory_space<vmem>>, vector<1x8x4xf32>
    %136 = vector.shape_cast %135 : vector<1x8x4xf32> to vector<8x4xf32>
    %137 = vector.shape_cast %100 : vector<8x4xf32> to vector<1x8x4xf32>
    tpu.vector_store %arg26[%c0_96, %c0_97, %c0_98], %137 {strides = array<i32>} : memref<1x8x4xf32, #tpu.memory_space<vmem>>, vector<1x8x4xf32>,
    %c0_99 = arith.constant 0 : index
    %c0_100 = arith.constant 0 : index
    %c0_101 = arith.constant 0 : index
    %138 = vector.load %arg27[%c0_99, %c0_100, %c0_101] : memref<1x8x4xf32, #tpu.memory_space<vmem>>, vector<1x8x4xf32>
    %139 = vector.shape_cast %138 : vector<1x8x4xf32> to vector<8x4xf32>
    %140 = vector.shape_cast %124 : vector<8x4xf32> to vector<1x8x4xf32>
    tpu.vector_store %arg27[%c0_99, %c0_100, %c0_101], %140 {strides = array<i32>} : memref<1x8x4xf32, #tpu.memory_space<vmem>>, vector<1x8x4xf32>,
    %c0_102 = arith.constant 0 : index
    %c0_103 = arith.constant 0 : index
    %c0_104 = arith.constant 0 : index
    %141 = vector.load %arg28[%c0_102, %c0_103, %c0_104] : memref<1x8x9xf32, #tpu.memory_space<vmem>>, vector<1x8x9xf32>
    %142 = vector.shape_cast %141 : vector<1x8x9xf32> to vector<8x9xf32>
    %143 = vector.shape_cast %129 : vector<8x9xf32> to vector<1x8x9xf32>
    tpu.vector_store %arg28[%c0_102, %c0_103, %c0_104], %143 {strides = array<i32>} : memref<1x8x9xf32, #tpu.memory_space<vmem>>, vector<1x8x9xf32>,
    %c0_105 = arith.constant 0 : index
    %c0_106 = arith.constant 0 : index
    %c0_107 = arith.constant 0 : index
    %144 = vector.load %arg29[%c0_105, %c0_106, %c0_107] : memref<1x8x640xf32, #tpu.memory_space<vmem>>, vector<1x8x640xf32>
    %145 = vector.shape_cast %144 : vector<1x8x640xf32> to vector<8x640xf32>
    %146 = vector.shape_cast %134 : vector<8x640xf32> to vector<1x8x640xf32>
    tpu.vector_store %arg29[%c0_105, %c0_106, %c0_107], %146 {strides = array<i32>} : memref<1x8x640xf32, #tpu.memory_space<vmem>>, vector<1x8x640xf32>,
    return
  }
  func.func @transform_0(%arg0: i32) -> (i32, i32, i32) {
    %c0_i32 = arith.constant 0 : i32
    %c0_i32_0 = arith.constant 0 : i32
    %c0_i32_1 = arith.constant 0 : i32
    return %arg0, %c0_i32, %c0_i32_0 : i32, i32, i32
  }
  func.func @transform_1(%arg0: i32) -> (i32, i32) {
    %c0_i32 = arith.constant 0 : i32
    %c0_i32_0 = arith.constant 0 : i32
    %c0_i32_1 = arith.constant 0 : i32
    return %c0_i32, %c0_i32_0 : i32, i32
  }
  func.func @transform_2(%arg0: i32) -> (i32, i32) {
    %c0_i32 = arith.constant 0 : i32
    %c0_i32_0 = arith.constant 0 : i32
    %c0_i32_1 = arith.constant 0 : i32
    return %c0_i32, %c0_i32_0 : i32, i32
  }
  func.func @transform_3(%arg0: i32) -> (i32, i32) {
    %c0_i32 = arith.constant 0 : i32
    %c0_i32_0 = arith.constant 0 : i32
    %c0_i32_1 = arith.constant 0 : i32
    return %c0_i32, %c0_i32_0 : i32, i32
  }
  func.func @transform_4(%arg0: i32) -> (i32, i32) {
    %c0_i32 = arith.constant 0 : i32
    %c0_i32_0 = arith.constant 0 : i32
    %c0_i32_1 = arith.constant 0 : i32
    return %c0_i32, %c0_i32_0 : i32, i32
  }
  func.func @transform_5(%arg0: i32) -> (i32, i32, i32) {
    %c0_i32 = arith.constant 0 : i32
    %c0_i32_0 = arith.constant 0 : i32
    %c0_i32_1 = arith.constant 0 : i32
    %c0_i32_2 = arith.constant 0 : i32
    return %c0_i32, %c0_i32_0, %c0_i32_1 : i32, i32, i32
  }
  func.func @transform_6(%arg0: i32) -> (i32, i32, i32) {
    %c0_i32 = arith.constant 0 : i32
    %c0_i32_0 = arith.constant 0 : i32
    %c0_i32_1 = arith.constant 0 : i32
    %c0_i32_2 = arith.constant 0 : i32
    return %c0_i32, %c0_i32_0, %c0_i32_1 : i32, i32, i32
  }
  func.func @transform_7(%arg0: i32) -> (i32, i32, i32) {
    %c0_i32 = arith.constant 0 : i32
    %c0_i32_0 = arith.constant 0 : i32
    %c0_i32_1 = arith.constant 0 : i32
    %c0_i32_2 = arith.constant 0 : i32
    return %c0_i32, %c0_i32_0, %c0_i32_1 : i32, i32, i32
  }
  func.func @transform_8(%arg0: i32) -> (i32, i32, i32) {
    %c0_i32 = arith.constant 0 : i32
    %c0_i32_0 = arith.constant 0 : i32
    %c0_i32_1 = arith.constant 0 : i32
    %c0_i32_2 = arith.constant 0 : i32
    return %c0_i32, %c0_i32_0, %c0_i32_1 : i32, i32, i32
  }
  func.func @transform_9(%arg0: i32) -> (i32, i32) {
    %c0_i32 = arith.constant 0 : i32
    %c0_i32_0 = arith.constant 0 : i32
    %c0_i32_1 = arith.constant 0 : i32
    return %c0_i32, %c0_i32_0 : i32, i32
  }
  func.func @transform_10(%arg0: i32) -> (i32, i32) {
    %c0_i32 = arith.constant 0 : i32
    %c0_i32_0 = arith.constant 0 : i32
    %c0_i32_1 = arith.constant 0 : i32
    return %c0_i32, %c0_i32_0 : i32, i32
  }
  func.func @transform_11(%arg0: i32) -> (i32, i32) {
    %c0_i32 = arith.constant 0 : i32
    %c0_i32_0 = arith.constant 0 : i32
    %c0_i32_1 = arith.constant 0 : i32
    return %c0_i32, %c0_i32_0 : i32, i32
  }
  func.func @transform_12(%arg0: i32) -> (i32, i32) {
    %c0_i32 = arith.constant 0 : i32
    %c0_i32_0 = arith.constant 0 : i32
    %c0_i32_1 = arith.constant 0 : i32
    return %c0_i32, %c0_i32_0 : i32, i32
  }
  func.func @transform_13(%arg0: i32) -> (i32, i32) {
    %c0_i32 = arith.constant 0 : i32
    %c0_i32_0 = arith.constant 0 : i32
    %c0_i32_1 = arith.constant 0 : i32
    return %c0_i32, %c0_i32_0 : i32, i32
  }
  func.func @transform_14(%arg0: i32) -> (i32, i32) {
    %c0_i32 = arith.constant 0 : i32
    %c0_i32_0 = arith.constant 0 : i32
    %c0_i32_1 = arith.constant 0 : i32
    return %c0_i32, %c0_i32_0 : i32, i32
  }
  func.func @transform_15(%arg0: i32) -> (i32, i32) {
    %c0_i32 = arith.constant 0 : i32
    %c0_i32_0 = arith.constant 0 : i32
    %c0_i32_1 = arith.constant 0 : i32
    return %c0_i32, %c0_i32_0 : i32, i32
  }
  func.func @transform_16(%arg0: i32) -> (i32, i32) {
    %c0_i32 = arith.constant 0 : i32
    %c0_i32_0 = arith.constant 0 : i32
    %c0_i32_1 = arith.constant 0 : i32
    return %c0_i32, %c0_i32_0 : i32, i32
  }
  func.func @transform_17(%arg0: i32) -> (i32, i32) {
    %c0_i32 = arith.constant 0 : i32
    %c0_i32_0 = arith.constant 0 : i32
    %c0_i32_1 = arith.constant 0 : i32
    return %c0_i32, %c0_i32_0 : i32, i32
  }
  func.func @transform_18(%arg0: i32) -> (i32, i32) {
    %c0_i32 = arith.constant 0 : i32
    %c0_i32_0 = arith.constant 0 : i32
    %c0_i32_1 = arith.constant 0 : i32
    return %c0_i32, %c0_i32_0 : i32, i32
  }
  func.func @transform_19(%arg0: i32) -> (i32, i32) {
    %c0_i32 = arith.constant 0 : i32
    %c0_i32_0 = arith.constant 0 : i32
    %c0_i32_1 = arith.constant 0 : i32
    return %c0_i32, %c0_i32_0 : i32, i32
  }
  func.func @transform_20(%arg0: i32) -> (i32, i32) {
    %c0_i32 = arith.constant 0 : i32
    %c0_i32_0 = arith.constant 0 : i32
    %c0_i32_1 = arith.constant 0 : i32
    return %c0_i32, %c0_i32_0 : i32, i32
  }
  func.func @transform_21(%arg0: i32) -> (i32, i32) {
    %c0_i32 = arith.constant 0 : i32
    %c0_i32_0 = arith.constant 0 : i32
    %c0_i32_1 = arith.constant 0 : i32
    return %c0_i32, %c0_i32_0 : i32, i32
  }
  func.func @transform_22(%arg0: i32) -> (i32, i32) {
    %c0_i32 = arith.constant 0 : i32
    %c0_i32_0 = arith.constant 0 : i32
    %c0_i32_1 = arith.constant 0 : i32
    return %c0_i32, %c0_i32_0 : i32, i32
  }
  func.func @transform_23(%arg0: i32) -> (i32, i32) {
    %c0_i32 = arith.constant 0 : i32
    %c0_i32_0 = arith.constant 0 : i32
    %c0_i32_1 = arith.constant 0 : i32
    return %c0_i32, %c0_i32_0 : i32, i32
  }
  func.func @transform_24(%arg0: i32) -> (i32, i32) {
    %c0_i32 = arith.constant 0 : i32
    %c0_i32_0 = arith.constant 0 : i32
    %c0_i32_1 = arith.constant 0 : i32
    return %c0_i32, %c0_i32_0 : i32, i32
  }
  func.func @transform_25(%arg0: i32) -> (i32, i32, i32) {
    %c0_i32 = arith.constant 0 : i32
    %c0_i32_0 = arith.constant 0 : i32
    %c0_i32_1 = arith.constant 0 : i32
    return %arg0, %c0_i32, %c0_i32_0 : i32, i32, i32
  }
  func.func @transform_26(%arg0: i32) -> (i32, i32, i32) {
    %c0_i32 = arith.constant 0 : i32
    %c0_i32_0 = arith.constant 0 : i32
    %c0_i32_1 = arith.constant 0 : i32
    return %arg0, %c0_i32, %c0_i32_0 : i32, i32, i32
  }
  func.func @transform_27(%arg0: i32) -> (i32, i32, i32) {
    %c0_i32 = arith.constant 0 : i32
    %c0_i32_0 = arith.constant 0 : i32
    %c0_i32_1 = arith.constant 0 : i32
    return %arg0, %c0_i32, %c0_i32_0 : i32, i32, i32
  }
  func.func @transform_28(%arg0: i32) -> (i32, i32, i32) {
    %c0_i32 = arith.constant 0 : i32
    %c0_i32_0 = arith.constant 0 : i32
    %c0_i32_1 = arith.constant 0 : i32
    return %arg0, %c0_i32, %c0_i32_0 : i32, i32, i32
  }
}

</mosaic_0001>

<bundles_post_ra>
// kernel: hoitr_forward.1
= control target key start
LH: loop header
LB: loop body
LE: loop exit
PB: predicated region body
PF: predicated region fallthrough
CT: control target
= control target key end

     0   :  { %s3917_s0 = inlined_call_operand.vmem [shape: f32[2,4,256], index: 0, kind: input, shape index: {}]   ;;  %s3918_s1 = inlined_call_operand.vmem [shape: f32[32,256], index: 1, kind: input, shape index: {}]   ;;  %s3919_s2 = inlined_call_operand.vmem [shape: f32[32,4], index: 2, kind: input, shape index: {}]   ;;  %s3920_s3 = inlined_call_operand.vmem [shape: f32[32,1], index: 3, kind: input, shape index: {}]   ;;  %s3921_s4 = inlined_call_operand.vmem [shape: f32[8,32], index: 4, kind: input, shape index: {}]   ;;  %s3922_s5 = inlined_call_operand.vmem [shape: f32[2,32,32], index: 5, kind: input, shape index: {}]   ;;  %s3923_s6 = inlined_call_operand.vmem [shape: f32[2,1,32], index: 6, kind: input, shape index: {}]   ;;  %s3924_s7 = inlined_call_operand.vmem [shape: f32[2,32,32], index: 7, kind: input, shape index: {}]   ;;  %s3925_s8 = inlined_call_operand.vmem [shape: f32[2,1,32], index: 8, kind: input, shape index: {}]   ;;  %s3926_s9 = inlined_call_operand.vmem [shape: f32[32,32], index: 9, kind: input, shape index: {}]   ;;  %s3927_s10 = inlined_call_operand.vmem [shape: f32[1,32], index: 10, kind: input, shape index: {}]   ;;  %s3928_s11 = inlined_call_operand.vmem [shape: f32[32,32], index: 11, kind: input, shape index: {}]   ;;  %s3929_s12 = inlined_call_operand.vmem [shape: f32[1,32], index: 12, kind: input, shape index: {}]   ;;  %s3930_s13 = inlined_call_operand.vmem [shape: f32[32,4], index: 13, kind: input, shape index: {}]   ;;  %s3931_s14 = inlined_call_operand.vmem [shape: f32[1,4], index: 14, kind: input, shape index: {}]   ;;  %s3932_s15 = inlined_call_operand.vmem [shape: f32[32,32], index: 15, kind: input, shape index: {}]   ;;  %s3933_s16 = inlined_call_operand.vmem [shape: f32[1,32], index: 16, kind: input, shape index: {}]   ;;  %s3934_s17 = inlined_call_operand.vmem [shape: f32[32,32], index: 17, kind: input, shape index: {}]   ;;  %s3935_s18 = inlined_call_operand.vmem [shape: f32[1,32], index: 18, kind: input, shape index: {}]   ;;  %s3936_s19 = inlined_call_operand.vmem [shape: f32[32,4], index: 19, kind: input, shape index: {}]   ;;  %s3937_s20 = inlined_call_operand.vmem [shape: f32[1,4], index: 20, kind: input, shape index: {}]   ;;  %s3938_s21 = inlined_call_operand.vmem [shape: f32[32,9], index: 21, kind: input, shape index: {}]   ;;  %s3939_s22 = inlined_call_operand.vmem [shape: f32[1,9], index: 22, kind: input, shape index: {}]   ;;  %s3940_s23 = inlined_call_operand.vmem [shape: f32[32,640], index: 23, kind: input, shape index: {}]   ;;  %s3941_s24 = inlined_call_operand.vmem [shape: f32[1,640], index: 24, kind: input, shape index: {}]   ;;  %s3942_s25 = inlined_call_operand.vmem [shape: f32[2,8,4], index: 25, kind: output, shape index: {0}]   ;;  %s3943_s26 = inlined_call_operand.vmem [shape: f32[2,8,4], index: 26, kind: output, shape index: {1}]   ;;  %s3944_s27 = inlined_call_operand.hbm [shape: f32[2,8,9], index: 27, kind: output, shape index: {2}]   ;;  %s3945_s28 = inlined_call_operand.hbm [shape: f32[2,8,640], index: 28, kind: output, shape index: {3}]  }
   0x1   :  { %3969 = sst [smem:[#allocation14_spill]] %s3917_s0 }
   0x2   :  { %3970 = sst [smem:[#allocation15_spill]] %s3918_s1 }
   0x3   :  { %3971 = sst [smem:[#allocation16_spill]] %s3919_s2 }
   0x4   :  { %3972 = sst [smem:[#allocation17_spill]] %s3920_s3 }
   0x5   :  { %3973 = sst [smem:[#allocation18_spill]] %s3921_s4 }
   0x6   :  { %3974 = sst [smem:[#allocation19_spill]] %s3922_s5 }
   0x7   :  { %3975 = sst [smem:[#allocation20_spill]] %s3923_s6 }
   0x8   :  { %3976 = sst [smem:[#allocation21_spill]] %s3924_s7 }
   0x9   :  { %3977 = sst [smem:[#allocation22_spill]] %s3925_s8 }
   0xa   :  { %3978 = sst [smem:[#allocation23_spill]] %s3926_s9 }
   0xb   :  { %3979 = sst [smem:[#allocation24_spill]] %s3927_s10 }
   0xc   :  { %3980 = sst [smem:[#allocation25_spill]] %s3928_s11 }
   0xd   :  { %3981 = sst [smem:[#allocation26_spill]] %s3929_s12 }
   0xe   :  { %3982 = sst [smem:[#allocation27_spill]] %s3930_s13 }
   0xf   :  { %3983 = sst [smem:[#allocation28_spill]] %s3931_s14 }
  0x10   :  { %3984 = sst [smem:[#allocation29_spill]] %s3932_s15 }
  0x11   :  { %3985 = sst [smem:[#allocation30_spill]] %s3933_s16 }
  0x12   :  { %3986 = sst [smem:[#allocation31_spill]] %s3943_s26 }
  0x13   :  { %34 = vsyncpa [#allocation3], 0 }
  0x14   :  { %36 = vsyncpa [#allocation3 + $0x1], 0 }
  0x15   :  { %37 = vsyncpa [#allocation5], 0 }
  0x16   :  { %39 = vsyncpa [#allocation5 + $0x1], 0  ;;  %s3318_s8 = smov 0   ;;  %s3320_s5 = smov 0  }
  0x17   :  { %s3322_s9 = smov 0   ;;  %s3324_s30 = smov 0  }
  0x18 LB: > { %3987 = sst [smem:[#allocation8_spill]] %s3154_s8  ;;  %s3339_s3 = sadd.s32 4294967295, %s3166_s30   ;;  %s3166_s30 = sphi %s3324_s30, %s4018_s30   ;;  %s3162_s9 = sphi %s3322_s9, %s4020_s9   ;;  %s3158_s5 = sphi %s3320_s5, %s4022_s5   ;;  %s3154_s8 = sphi %s3318_s8, %s4021_s8  }
  0x19   : > { %3988 = sst [smem:[#allocation9_spill]] %s3162_s9  ;;  %s2752_s6 = sadd.s32 4294967294, %s3166_s30  }
  0x1a   : > { %3989 = sst [smem:[#allocation10_spill]] %s3166_s30  ;;  %s3343_s10 = sadd.s32 1, %s3166_s30  }
  0x1b   : > { %3990 = sst [smem:[#allocation11_spill]] %s3343_s10  ;;  %s634_s0 = sadd.s32 1, %s3162_s9 }
  0x1c   : > { %s631_s11 = ssub.s32 %s3166_s30, %s3343_s10  ;;  %p644_p0 = scmp.ne.s32.totalorder %s3162_s9, %s3158_s5 }
  0x1d   : > { %p632_p1 = scmp.eq.s32.totalorder %s631_s11, 0  ;;  %p645_p2 = scmp.eq.s32.totalorder %s3339_s3, 1 }
  0x1e   : > { %p650_p3 = scmp.ne.s32.totalorder %s3158_s5, %s3154_s8  ;;  %p651_p4 = scmp.eq.s32.totalorder %s2752_s6, 1 }
  0x1f   : > { %s3354_s29 = scalar_select %p632_p1, %s3162_s9, %s634_s0  }
  0x20   : > { %p3356_p5 = por %p645_p2, %p644_p0  ;;  %p3360_p6 = por %p651_p4, %p650_p3 }
  0x21   : > { %3991 = sst [smem:[#allocation12_spill]] %s3354_s29  ;;  %p2755_p7 = scmp.ge.s32.totalorder %s3166_s30, 1 }
  0x22   : > { %s3993_s7 = scalar_select %p3360_p6, 1, 0 }
  0x23   : > { %p775_p8 = scmp.lt.s32.totalorder %s3166_s30, 3 }
  0x24   : > { %3994 = sst [smem:[#allocation13_spill]] %s3993_s7 }
  0x25   : > { %p776_p9 = pnand %p2755_p7, %p775_p8 }
  0x26   : > { %p862_p10 = scmp.lt.s32.totalorder (!%p776_p9), %s3339_s3, 1  ;;  %s3995_s4 = sld [smem:[#allocation17_spill]] (!%p776_p9) }
  0x27   : > { %779 = sbr.rel (%p776_p9) target bundleno = 3314 (0xcf2), region = 120  ;;  %s3996_s30 = sld [smem:[#allocation14_spill]] (!%p776_p9) }
  0x28   : > { %s3997_s11 = sld [smem:[#allocation16_spill]] (!%p776_p9) }
  0x29   : > { %s3999_s12 = sld [smem:[#allocation18_spill]] (!%p776_p9) }
  0x2a   : > { %s4000_s9 = sld [smem:[#allocation19_spill]] (!%p776_p9) }
  0x2b   : > { %s4002_s0 = sld [smem:[#allocation21_spill]] (!%p776_p9) }
  0x2c   : > { %v3168_v0 = vmov 0.0   ;;  %v881_v1 = vld [vmem:[%s3995_s4 + $0x8] sm:$0xff]  ;;  %s863_s6 = scalar_select %p862_p10, %s3339_s3, 1  ;;  %v3169_v2 = vmov 0   ;;  %v883_v3 = vld [vmem:[%s3995_s4 + $0x18] sm:$0xff]  ;;  %v880_v4 = vld [vmem:[%s3995_s4] sm:$0xff] }
  0x2d   : > { %988 = vmatprep.mubr.f32.mxu0 %v3168_v0  ;;  %1099 = vmatprep.mubr.f32.mxu1 %v3168_v0  ;;  %v882_v5 = vld [vmem:[%s3995_s4 + $0x10] sm:$0xff]  ;;  %vm919_vm0 = vcmask 1043456   ;;  %vm906_vm1 = vcmask 31744   ;;  %vm1031_vm2 = vcmask 261120   ;;  %vm3170_vm3 = vmmov 0   ;;  %s4005_s7 = sld [smem:[#allocation22_spill]] }
  0x2e   : > { %3054 = vset.pattern.permute.xlu1 %v3169_v2  ;;  %3053 = vset.pattern.permute.xlu0 %v3169_v2  ;;  %s3376_s29 = sshll.u32 %s863_s6, 3  ;;  %v876_v8 = vld [vmem:[%s3997_s11] sm:$0xff]  ;;  %v877_v9 = vld [vmem:[%s3997_s11 + $0x8] sm:$0xff]  ;;  %v878_v10 = vld [vmem:[%s3997_s11 + $0x10] sm:$0xff]  ;;  %s3998_s6 = sld [smem:[#allocation15_spill]]  ;;  %vm2559_vm4 = vcmask 72704  }
  0x2f   : > { %891 = vperm.xlu1 %3054, %v881_v1   ;;  %901 = vperm.xlu0 %3053, %v883_v3   ;;  %s866_s26 = scalar_lea.vmem %s3996_s30, %s3376_s29  ;;  %v879_v11 = vld [vmem:[%s3997_s11 + $0x18] sm:$0xff]  ;;  %v3460_v48 = vld [vmem:[%s3999_s12] sm:$0xff]  ;;  %s4006_s11 = sld [smem:[#allocation23_spill]] }
  0x30   : > { %v875_v6 = vld [vmem:[%s866_s26] sm:$0xff]  ;;  %s4001_s10 = smov %s4000_s9  ;;  %v1196_v62 = vld [vmem:[%s4000_s9 + $0x18] sm:$0xff]  ;;  %s4003_s9 = sld [smem:[#allocation20_spill]] }
  0x31   : > { %v905_v7 = vcombine.high %v875_v6, %v875_v6  ;;  %v1195_v63 = vld [vmem:[%s4001_s10 + $0x10] sm:$0xff]  ;;  %v1194_v1 = vld [vmem:[%s4001_s10 + $0x8] sm:$0xff]  ;;  %v1193_v2 = vld [vmem:[%s4001_s10] sm:$0xff]  ;;  %s4008_s13 = sld [smem:[#allocation27_spill]] }
  0x32   : > { %s4009_s8 = sld [smem:[#allocation24_spill]] }
  0x33   : > { %886 = vperm.xlu1 %3054, %v880_v4   ;;  %896 = vperm.xlu0 %3053, %v882_v5   ;;  %s4010_s15 = sld [smem:[#allocation29_spill]] }
  0x34   : > { %2761 = vmatprep.subr.msk.mxu0 %vm919_vm0, %v905_v7  ;;  %v1020_v24 = vld [vmem:[%s3998_s6 + $0x38] sm:$0xff]  ;;  %v1019_v26 = vld [vmem:[%s3998_s6 + $0x30] sm:$0xff]  ;;  %v1018_v29 = vld [vmem:[%s3998_s6 + $0x28] sm:$0xff]  ;;  %s4012_s16 = sld [smem:[#allocation30_spill]] }
  0x35   : > { %2762 = vmatpush1.msk.msra.mxu0 %vm919_vm0, %v875_v6  ;;  %v1017_v32 = vld [vmem:[%s3998_s6 + $0x20] sm:$0xff]  ;;  %v1016_v35 = vld [vmem:[%s3998_s6 + $0x18] sm:$0xff]  ;;  %v1015_v38 = vld [vmem:[%s3998_s6 + $0x10] sm:$0xff]  ;;  %s4013_s14 = sld [smem:[#allocation28_spill]] }
  0x36   : > { %2763 = vmatmul.mubr.msk.f32.vlgmr.msra.gmra.mxu0 %vm906_vm1, %v876_v8  ;;  %v1014_v41 = vld [vmem:[%s3998_s6 + $0x8] sm:$0xff]  ;;  %v1013_v43 = vld [vmem:[%s3998_s6] sm:$0xff]  ;;  %v1281_v7 = vld [vmem:[%s4002_s0 + $0x18] sm:$0xff]  ;;  %s4004_s26 = smov %s4003_s9  ;;  %s3760_s6 = sand.u32 1, %s3158_s5  }
  0x37   : > { %994 = vmatprep.mubr.f32.mxu0 %v3168_v0 }
  0x3a   : > { %2764 = vmatmul.mubr.msk.f32.gmra.mxu0 %vm906_vm1, %v877_v9  ;;  %v1280_v9 = vld [vmem:[%s4002_s0 + $0x10] sm:$0xff] }
  0x3b   : > { %1000 = vmatprep.mubr.f32.mxu0 %v3168_v0 }
  0x3e   : > { %2765 = vmatmul.mubr.msk.f32.gmra.mxu0 %vm906_vm1, %v878_v10 }
  0x3f   : > { %1006 = vmatprep.mubr.f32.mxu0 %v3168_v0 }
  0x42   : > { %2766 = vmatmul.mubr.msk.f32.gmra.mxu0 %vm906_vm1, %v879_v11  ;;  %v1279_v11 = vld [vmem:[%s4002_s0 + $0x8] sm:$0xff] }
  0xaa   : > { %v902_v16 = vpop.permute.xlu0 %901  ;;  %v892_v19 = vpop.permute.xlu1 %891 }
  0xae   : > { %v897_v21 = vpop.permute.xlu0 %896  ;;  %v887_v30 = vpop.permute.xlu1 %886 }
  0xf6   : > { %v990_v12 = vpop.f32.mrf.mxu0 }
  0xf7   : > { %v991_v40 = vadd.f32 %v990_v12, %v887_v30  ;;  %v1278_v12 = vld [vmem:[%s4002_s0] sm:$0xff] }
  0xf8   : > { %v992_v13 = vpop.f32.mrf.mxu0 }
  0xf9   : > { %v993_v37 = vadd.f32 %v992_v13, %v887_v30  ;;  %v3453_v47 = vadd.f32 %v1013_v43, %v991_v40  ;;  %v2768_v13 = vld [vmem:[%s4003_s9] ss:$0 sm:$0xff]  ;;  %v2774_v43 = vld [vmem:[%s4001_s10 + $0x28] sm:$0xff]  ;;  %s4011_s9 = sld [smem:[#allocation26_spill]] }
  0xfa   : > { %v996_v14 = vpop.f32.mrf.mxu0 }
  0xfb   : > { %v997_v34 = vadd.f32 %v996_v14, %v892_v19  ;;  %v3450_v46 = vadd.f32 %v1014_v41, %v993_v37  ;;  %v2776_v37 = vld [vmem:[%s4001_s10 + $0x38] sm:$0xff] }
  0xfc   : > { %v998_v15 = vpop.f32.mrf.mxu0 }
  0xfd   : > { %v999_v31 = vadd.f32 %v998_v15, %v892_v19  ;;  %v3447_v45 = vadd.f32 %v1015_v38, %v997_v34  ;;  %v2775_v38 = vld [vmem:[%s4001_s10 + $0x30] sm:$0xff] }
  0xfe   : > { %v1002_v17 = vpop.f32.mrf.mxu0 }
  0xff   : > { %v1003_v28 = vadd.f32 %v1002_v17, %v897_v21  ;;  %v3443_v44 = vadd.f32 %v1016_v35, %v999_v31 }
 0x100   : > { %v1004_v18 = vpop.f32.mrf.mxu0 }
 0x101   : > { %v1005_v25 = vadd.f32 %v1004_v18, %v897_v21  ;;  %v3436_v42 = vadd.f32 %v1017_v32, %v1003_v28  ;;  %v2770_v18 = vld [vmem:[%s4005_s7] ss:$0 sm:$0xff] }
 0x102   : > { %v1008_v20 = vpop.f32.mrf.mxu0 }
 0x103   : > { %v1009_v22 = vadd.f32 %v1008_v20, %v902_v16  ;;  %v3429_v39 = vadd.f32 %v1018_v29, %v1005_v25 }
 0x104   : > { %v1010_v23 = vpop.f32.mrf.mxu0 }
 0x105   : > { %v1011_v27 = vadd.f32 %v1010_v23, %v902_v16  ;;  %v3424_v36 = vadd.f32 %v1019_v26, %v1009_v22 }
 0x107   : > { %v3419_v33 = vadd.f32 %v1020_v24, %v1011_v27 }
 0x109   : > { %1059 = vmatprep.subr.mxu1 %v3419_v33  ;;  %1147 = vmatprep.subr.mxu0 %v3419_v33 }
 0x10a   : > { %1060 = vmatpush1.msra.mxu1 %v3424_v36  ;;  %1148 = vmatpush1.xpose.msra.mxu0 %v3424_v36 }
 0x10b   : > { %1061 = vmatprep.subr.mxu1 %v3429_v39  ;;  %1149 = vmatprep.subr.mxu0 %v3429_v39 }
 0x10c   : > { %1062 = vmatpush1.msra.mxu1 %v3436_v42 }
 0x10d   : > { %1063 = vmatprep.subr.mxu1 %v3443_v44 }
 0x10e   : > { %1064 = vmatpush1.msra.mxu1 %v3447_v45  ;;  %1150 = vmatpush1.xpose.msra.mxu0 %v3436_v42 }
 0x10f   : > { %1065 = vmatprep.subr.mxu1 %v3450_v46  ;;  %1151 = vmatprep.subr.mxu0 %v3443_v44 }
 0x110   : > { %1066 = vmatpush1.msra.mxu1 %v3453_v47 }
 0x111   : > { %2767 = vmatmul.mubr.msk.f32.vlgmr.msra.gmra.mxu1 %vm1031_vm2, %v3460_v48  ;;  %2872 = vmatprep.subr.mxu1 %v3168_v0 }
 0x112   : > { %1152 = vmatpush1.xpose.msra.mxu0 %v3447_v45  ;;  %2873 = vmatpush3.msra.mxu1 %v1196_v62 }
 0x113   : > { %1153 = vmatprep.subr.mxu0 %v3450_v46  ;;  %2874 = vmatprep.subr.mxu1 %v3168_v0 }
 0x114   : > { %2875 = vmatpush3.msra.mxu1 %v1195_v63  ;;  %2880 = vmatprep.mubr.msk.f32.mxu1 %vm3170_vm3, %v3168_v0  ;;  %v2785_v63 = vld [vmem:[%s4005_s7 + $0x1] ss:$0 sm:$0xff] }
 0x115   : > { %2876 = vmatprep.subr.mxu1 %v3168_v0 }
 0x116   : > { %1154 = vmatpush1.xpose.msra.mxu0 %v3453_v47  ;;  %2877 = vmatpush3.msra.mxu1 %v1194_v1 }
 0x117   : > { %1391 = vmatprep.subr.mxu0 %v3419_v33  ;;  %2878 = vmatprep.subr.mxu1 %v3168_v0 }
 0x118   : > { %2879 = vmatpush3.msra.mxu1 %v1193_v2 }
 0x119   : > { %2883 = vmatprep.subr.mxu1 %v3168_v0 }
 0x1d1   : > { %v1101_v49 = vpop.f32.mrf.mxu1 }
 0x1d2   : > { %v1106_v51 = vmul.f32 0.17677669, %v1101_v49  ;;  %v2782_v49 = vld [vmem:[%s4002_s0 + $0x30] sm:$0xff] }
 0x1d3   : > { %v1103_v50 = vpop.f32.mrf.mxu1 }
 0x1d4   : > { %v1107_v52 = vmul.f32 0.17677669, %v1103_v50  ;;  %v2781_v50 = vld [vmem:[%s4002_s0 + $0x28] sm:$0xff] }
 0x1d6   : > { %v1108_v53 = vmax.f32 %v1106_v51, %v1107_v52 }
 0x1d8   : > { %1109 = vmax.xlane.f32.xlu0 %v1108_v53  ;;  %v2778_v53 = vld [vmem:[%s4004_s26 + $0x1] ss:$0 sm:$0xff] }
 0x261   : > { %v1110_v54 = vpop.xlane.xlu0 %1109 }
 0x262   : > { %v1111_v55 = vsub.f32 %v1106_v51, %v1110_v54  ;;  %v1112_v56 = vsub.f32 %v1107_v52, %v1110_v54  ;;  %v2780_v51 = vld [vmem:[%s4002_s0 + $0x20] sm:$0xff]  ;;  %v1703_v52 = vld [vmem:[%s4006_s11 + $0x18] sm:$0xff] }
 0x264   : > { %v1113_v57 = vmul.f32 1.442695, %v1111_v55  ;;  %v1115_v58 = vmul.f32 1.442695, %v1112_v56 }
 0x266   : > { %3056 = vpow2.f32 %v1113_v57 }
 0x267   : > { %3058 = vpow2.f32 %v1115_v58  ;;  %v1702_v58 = vld [vmem:[%s4006_s11 + $0x10] sm:$0xff] }
 0x273   : > { %v3057_v59 = vpop.eup %3056 }
 0x274   : > { %v3059_v60 = vpop.eup %3058 }
 0x275   : > { %v1117_v61 = vadd.f32 %v3059_v60, %v3057_v59 }
 0x277   : > { %1118 = vadd.xlane.f32.xlu1 %v1117_v61 }
 0x300   : > { %v1119_v3 = vpop.xlane.xlu1 %1118 }
 0x301   : > { %3060 = vrcp.f32 %v1119_v3 }
 0x30e   : > { %v3061_v4 = vpop.eup %3060 }
 0x30f   : > { %v1122_v5 = vmul.f32 %v3061_v4, %v3059_v60  ;;  %v1121_v6 = vmul.f32 %v3061_v4, %v3057_v59  ;;  %v1701_v59 = vld [vmem:[%s4006_s11 + $0x8] sm:$0xff]  ;;  %v1700_v60 = vld [vmem:[%s4006_s11] sm:$0xff] }
 0x311   : > { %1187 = vmatprep.mubr.f32.mxu0 %v1122_v5 }
 0x312   : > { %1188 = vmatmul.mubr.f32.vlgmr.msra.gmra.mxu0 %v1121_v6 }
 0x313   : > { %1392 = vmatpush1.msra.mxu0 %v3424_v36  ;;  %1431 = vmatprep.mubr.f32.mxu0 %v3168_v0 }
 0x314   : > { %1393 = vmatprep.subr.mxu0 %v3429_v39 }
 0x315   : > { %1394 = vmatpush1.msra.mxu0 %v3436_v42 }
 0x316   : > { %1395 = vmatprep.subr.mxu0 %v3443_v44 }
 0x317   : > { %1396 = vmatpush1.msra.mxu0 %v3447_v45 }
 0x318   : > { %1397 = vmatprep.subr.mxu0 %v3450_v46 }
 0x319   : > { %1398 = vmatpush1.msra.mxu0 %v3453_v47 }
 0x31a   : > { %2894 = vmatprep.subr.mxu0 %v3168_v0 }
 0x3d2   : > { %v1189_v8 = vpop.f32.mrf.mxu0 }
 0x3d3   : > { %2881 = vmatmul.mubr.msk.f32.vlgmr.msra.gmra.mxu1 %vm1031_vm2, %v1189_v8 }
 0x3d4   : > { %2884 = vmatpush3.msra.mxu1 %v1281_v7  ;;  %v1191_v10 = vpop.f32.mrf.mxu0  ;;  %2891 = vmatprep.mubr.msk.f32.mxu1 %vm3170_vm3, %v3168_v0  ;;  %v1713_v7 = vld [vmem:[%s4008_s13 + $0x18] sm:$0xff] }
 0x3d5   : > { %2885 = vmatprep.subr.mxu1 %v3168_v0 }
 0x3d6   : > { %2886 = vmatpush3.msra.mxu1 %v1280_v9  ;;  %v2787_v9 = vld [vmem:[%s4009_s8] ss:$0 sm:$0xff]  ;;  %s3004_s8 = smul.u32 40, %s3760_s6 }
 0x3d7   : > { %2887 = vmatprep.subr.mxu1 %v3168_v0 }
 0x3d8   : > { %2888 = vmatpush3.msra.mxu1 %v1279_v11  ;;  %s3823_s1 = scalar_lea.vmem [#allocation4], %s3004_s8  ;;  %s2807_s8 = sshll.u32 %s3339_s3, 7 }
 0x3d9   : > { %2889 = vmatprep.subr.mxu1 %v3168_v0  ;;  %s2597_s11 = scalar_lea.hbm %s3944_s27, %s2807_s8 }
 0x3da   : > { %2890 = vmatpush3.msra.mxu1 %v1278_v12 }
 0x3db   : > { %1479 = vmatprep.subr.mxu1 %v3419_v33 }
 0x493   : > { %v1273_v14 = vpop.f32.mrf.mxu1 }
 0x494   : > { %v1274_v15 = vadd.f32 %v2768_v13, %v1273_v14  ;;  %v1963_v14 = vld [vmem:[%s4010_s15 + $0x18] sm:$0xff] }
 0x495   : > { %v2882_v16 = vpop.f32.mrf.mxu1 }
 0x496   : > { %v1277_v17 = vmax.f32 %v1274_v15, 0.0  ;;  %v1962_v15 = vld [vmem:[%s4010_s15 + $0x10] sm:$0xff]  ;;  %v1961_v16 = vld [vmem:[%s4010_s15 + $0x8] sm:$0xff] }
 0x498   : > { %2892 = vmatmul.mubr.msk.f32.vlgmr.msra.gmra.mxu1 %vm1031_vm2, %v1277_v17  ;;  %v1960_v17 = vld [vmem:[%s4010_s15] sm:$0xff]  ;;  %s3171_s15 = smov [#allocation2]  }
 0x499   : > { %1480 = vmatpush1.xpose.msra.mxu1 %v3424_v36 }
 0x49a   : > { %1481 = vmatprep.subr.mxu1 %v3429_v39 }
 0x49d   : > { %1482 = vmatpush1.xpose.msra.mxu1 %v3436_v42 }
 0x49e   : > { %1483 = vmatprep.subr.mxu1 %v3443_v44  ;;  %v2773_v44 = vld [vmem:[%s4001_s10 + $0x20] sm:$0xff] }
 0x4a1   : > { %1484 = vmatpush1.xpose.msra.mxu1 %v3447_v45 }
 0x4a2   : > { %1485 = vmatprep.subr.mxu1 %v3450_v46 }
 0x4a5   : > { %1486 = vmatpush1.xpose.msra.mxu1 %v3453_v47  ;;  %v2783_v47 = vld [vmem:[%s4002_s0 + $0x38] sm:$0xff]  ;;  %s4007_s0 = sld [smem:[#allocation25_spill]] }
 0x4a6   : > { %2916 = vmatprep.subr.mxu1 %v3168_v0 }
 0x4ab   : > { %v1708_v61 = vld [vmem:[%s4007_s0 + $0x18] sm:$0xff]  ;;  %v1707_v62 = vld [vmem:[%s4007_s0 + $0x10] sm:$0xff]  ;;  %v1706_v5 = vld [vmem:[%s4007_s0 + $0x8] sm:$0xff] }
 0x4ac   : > { %v1705_v6 = vld [vmem:[%s4007_s0] sm:$0xff]  ;;  %s2756_s0 = sshll.u32 %s3760_s6, 3 }
 0x558   : > { %v1358_v19 = vpop.f32.mrf.mxu1 }
 0x559   : > { %v1359_v20 = vadd.f32 %v2770_v18, %v1358_v19  ;;  %v1711_v18 = vld [vmem:[%s4008_s13 + $0x8] sm:$0xff]  ;;  %v1710_v19 = vld [vmem:[%s4008_s13] sm:$0xff] }
 0x55a   : > { %v2893_v21 = vpop.f32.mrf.mxu1 }
 0x55b   : > { %v1362_v22 = vadd.f32 %v1359_v20, %v1189_v8  ;;  %v1712_v8 = vld [vmem:[%s4008_s13 + $0x10] sm:$0xff]  ;;  %v2789_v20 = vld [vmem:[%s4011_s9] ss:$0 sm:$0xff]  ;;  %s3801_s9 = scalar_lea.vmem [#allocation2], %s2756_s0  ;;  %s870_s0 = scalar_lea.vmem %s3942_s25, %s3376_s29 }
 0x55c   : > { %s2599_s10 = sshll.u32 %s3801_s9, 4  ;;  %s2575_s13 = scalar_lea.sflag [#allocation3], %s3760_s6  ;;  %s2600_s10 = int_to_ptr.vmem [resolvable:$true] %s2599_s10 }
 0x55d   : > { %v1363_v23 = vadd.f32 %v1362_v22, %v3460_v48 }
 0x55f   : > { %2772 = vmatmul.mubr.msk.f32.vlgmr.msra.gmra.mxu0 %vm1031_vm2, %v1363_v23 }
 0x560   : > { %2902 = vmatprep.mubr.msk.f32.mxu0 %vm3170_vm3, %v3168_v0  ;;  %2895 = vmatpush3.msra.mxu0 %v2776_v37  ;;  %v2217_v37 = vld [vmem:[%s3938_s21] sm:$0xff] }
 0x561   : > { %2896 = vmatprep.subr.mxu0 %v3168_v0 }
 0x562   : > { %2897 = vmatpush3.msra.mxu0 %v2775_v38  ;;  %v2316_v38 = vld [vmem:[%s3940_s23 + $0x90] sm:$0xff] }
 0x563   : > { %2898 = vmatprep.subr.mxu0 %v3168_v0 }
 0x564   : > { %2899 = vmatpush3.msra.mxu0 %v2774_v43  ;;  %v2305_v43 = vld [vmem:[%s3940_s23 + $0x38] sm:$0xff] }
 0x565   : > { %2900 = vmatprep.subr.mxu0 %v3168_v0 }
 0x566   : > { %2901 = vmatpush3.msra.mxu0 %v2773_v44  ;;  %v2301_v44 = vld [vmem:[%s3940_s23 + $0x18] sm:$0xff] }
 0x567   : > { %2905 = vmatprep.subr.mxu0 %v3168_v0 }
 0x61f   : > { %v1433_v24 = vpop.f32.mrf.mxu0 }
 0x620   : > { %v1438_v26 = vmul.f32 0.17677669, %v1433_v24 }
 0x621   : > { %v1435_v25 = vpop.f32.mrf.mxu0 }
 0x622   : > { %v1439_v27 = vmul.f32 0.17677669, %v1435_v25  ;;  %v1968_v25 = vld [vmem:[%s3934_s17 + $0x18] sm:$0xff] }
 0x624   : > { %v1440_v28 = vmax.f32 %v1438_v26, %v1439_v27 }
 0x626   : > { %1441 = vmax.xlane.f32.xlu0 %v1440_v28  ;;  %v1966_v28 = vld [vmem:[%s3934_s17 + $0x8] sm:$0xff] }
 0x6af   : > { %v1442_v29 = vpop.xlane.xlu0 %1441 }
 0x6b0   : > { %v1443_v30 = vsub.f32 %v1438_v26, %v1442_v29  ;;  %v1444_v31 = vsub.f32 %v1439_v27, %v1442_v29  ;;  %v1967_v26 = vld [vmem:[%s3934_s17 + $0x10] sm:$0xff]  ;;  %v2794_v27 = vld [vmem:[%s4012_s16] ss:$0 sm:$0xff]  ;;  %s3080_s16 = sshll.u32 %s3171_s15, 4  ;;  %s3081_s16 = int_to_ptr.vmem [resolvable:$false] %s3080_s16 }
 0x6b1   : > { %s3082_s7 = scalar_lea.vmem %s3081_s16, 256  ;;  %p3083_p0 = scmp.lt.s32.totalorder %s2600_s10, %s3081_s16 }
 0x6b2   : > { %v1445_v32 = vmul.f32 1.442695, %v1443_v30  ;;  %v1447_v33 = vmul.f32 1.442695, %v1444_v31  ;;  %v1965_v31 = vld [vmem:[%s3934_s17] sm:$0xff] }
 0x6b4   : > { %3062 = vpow2.f32 %v1445_v32 }
 0x6b5   : > { %3064 = vpow2.f32 %v1447_v33 }
 0x6c1   : > { %v3063_v34 = vpop.eup %3062 }
 0x6c2   : > { %v3065_v35 = vpop.eup %3064 }
 0x6c3   : > { %v1449_v36 = vadd.f32 %v3065_v35, %v3063_v34 }
 0x6c5   : > { %1450 = vadd.xlane.f32.xlu0 %v1449_v36  ;;  %v2218_v36 = vld [vmem:[%s3938_s21 + $0x8] sm:$0xff] }
 0x74e   : > { %v1451_v39 = vpop.xlane.xlu0 %1450 }
 0x74f   : > { %3066 = vrcp.f32 %v1451_v39  ;;  %v2315_v39 = vld [vmem:[%s3940_s23 + $0x88] sm:$0xff] }
 0x75c   : > { %v3067_v40 = vpop.eup %3066 }
 0x75d   : > { %v1454_v41 = vmul.f32 %v3067_v40, %v3065_v35  ;;  %v1453_v42 = vmul.f32 %v3067_v40, %v3063_v34  ;;  %v2220_v34 = vld [vmem:[%s3938_s21 + $0x18] sm:$0xff]  ;;  %v2219_v35 = vld [vmem:[%s3938_s21 + $0x10] sm:$0xff]  ;;  %v2311_v40 = vld [vmem:[%s3940_s23 + $0x68] sm:$0xff] }
 0x75f   : > { %1519 = vmatprep.mubr.f32.mxu1 %v1454_v41  ;;  %v2310_v41 = vld [vmem:[%s3940_s23 + $0x60] sm:$0xff] }
 0x760   : > { %1520 = vmatmul.mubr.f32.vlgmr.msra.gmra.mxu1 %v1453_v42  ;;  %v2306_v42 = vld [vmem:[%s3940_s23 + $0x40] sm:$0xff] }
 0x761   : > { %2924 = vmatprep.mubr.msk.f32.mxu1 %vm3170_vm3, %v3168_v0  ;;  %2917 = vmatpush3.msra.mxu1 %v1703_v52 }
 0x762   : > { %2918 = vmatprep.subr.mxu1 %v3168_v0 }
 0x763   : > { %2919 = vmatpush3.msra.mxu1 %v1702_v58 }
 0x764   : > { %2920 = vmatprep.subr.mxu1 %v3168_v0 }
 0x765   : > { %2921 = vmatpush3.msra.mxu1 %v1701_v59  ;;  %v2320_v59 = vlaneseq }
 0x766   : > { %2922 = vmatprep.subr.mxu1 %v3168_v0 }
 0x767   : > { %2923 = vmatpush3.msra.mxu1 %v1700_v60 }
 0x768   : > { %2938 = vmatprep.subr.mxu1 %v3168_v0 }
 0x820   : > { %v1521_v45 = vpop.f32.mrf.mxu1 }
 0x821   : > { %v1525_v46 = vadd.f32 %v1521_v45, %v1362_v22  ;;  %v2300_v45 = vld [vmem:[%s3940_s23 + $0x10] sm:$0xff] }
 0x822   : > { %v1523_v48 = vpop.f32.mrf.mxu1 }
 0x823   : > { %2903 = vmatmul.mubr.msk.f32.vlgmr.msra.gmra.mxu0 %vm1031_vm2, %v1525_v46  ;;  %v1971_v48 = vld [vmem:[%s3936_s19 + $0x8] sm:$0xff] }
 0x824   : > { %2906 = vmatpush3.msra.mxu0 %v2783_v47  ;;  %2913 = vmatprep.mubr.msk.f32.mxu0 %vm3170_vm3, %v3168_v0  ;;  %v1972_v47 = vld [vmem:[%s3936_s19 + $0x10] sm:$0xff] }
 0x825   : > { %2907 = vmatprep.subr.mxu0 %v3168_v0 }
 0x826   : > { %2908 = vmatpush3.msra.mxu0 %v2782_v49  ;;  %v1970_v49 = vld [vmem:[%s3936_s19] sm:$0xff] }
 0x827   : > { %2909 = vmatprep.subr.mxu0 %v3168_v0 }
 0x828   : > { %2910 = vmatpush3.msra.mxu0 %v2781_v50  ;;  %v2314_v50 = vld [vmem:[%s3940_s23 + $0x80] sm:$0xff] }
 0x829   : > { %2911 = vmatprep.subr.mxu0 %v3168_v0 }
 0x82a   : > { %2912 = vmatpush3.msra.mxu0 %v2780_v51  ;;  %v2791_v51 = vld [vmem:[%s4013_s14] ss:$0 sm:$0xff]  ;;  %s3076_s14 = scalar_lea.vmem %s2600_s10, 128 }
 0x82b   : > { %2927 = vmatprep.subr.mxu0 %v3168_v0  ;;  %p3077_p11 = scmp.ne.s32.totalorder %s2600_s10, %s3076_s14  ;;  %p3084_p1 = scmp.lt.s32.totalorder %s3082_s7, %s3076_s14 }
 0x82d   : > { %p3078_p12 = pnand %p3077_p11, %p3356_p5  ;;  %p3085_p2 = por %p3084_p1, %p3083_p0 }
 0x82f   : > { %p3079_p13 = pneg %p3078_p12 }
 0x831   : > { %p3086_p3 = pnand %p3085_p2, %p3079_p13 }
 0x8e3   : > { %v1608_v54 = vpop.f32.mrf.mxu0 }
 0x8e4   : > { %v1609_v55 = vadd.f32 %v2778_v53, %v1608_v54 }
 0x8e5   : > { %v2904_v56 = vpop.f32.mrf.mxu0 }
 0x8e6   : > { %v1612_v57 = vmax.f32 %v1609_v55, 0.0  ;;  %v2796_v56 = vld [vmem:[%s3935_s18] ss:$0 sm:$0xff] }
 0x8e8   : > { %2914 = vmatmul.mubr.msk.f32.vlgmr.msra.gmra.mxu0 %vm1031_vm2, %v1612_v57 }
 0x8e9   : > { %2935 = vmatprep.mubr.msk.f32.mxu0 %vm3170_vm3, %v3168_v0  ;;  %2928 = vmatpush3.msra.mxu0 %v1708_v61 }
 0x8ea   : > { %2929 = vmatprep.subr.mxu0 %v3168_v0 }
 0x8eb   : > { %2930 = vmatpush3.msra.mxu0 %v1707_v62  ;;  %v2313_v62 = vld [vmem:[%s3940_s23 + $0x78] sm:$0xff] }
 0x8ec   : > { %2931 = vmatprep.subr.mxu0 %v3168_v0 }
 0x8ed   : > { %2932 = vmatpush3.msra.mxu0 %v1706_v5  ;;  %v2304_v5 = vld [vmem:[%s3940_s23 + $0x30] sm:$0xff] }
 0x8ee   : > { %2933 = vmatprep.subr.mxu0 %v3168_v0 }
 0x8ef   : > { %2934 = vmatpush3.msra.mxu0 %v1705_v6  ;;  %v2303_v6 = vld [vmem:[%s3940_s23 + $0x28] sm:$0xff] }
 0x8f0   : > { %2949 = vmatprep.subr.mxu0 %v3168_v0 }
 0x9a8   : > { %v1695_v1 = vpop.f32.mrf.mxu0 }
 0x9a9   : > { %v1696_v2 = vadd.f32 %v2785_v63, %v1695_v1  ;;  %v2309_v63 = vld [vmem:[%s3940_s23 + $0x58] sm:$0xff]  ;;  %v2308_v1 = vld [vmem:[%s3940_s23 + $0x50] sm:$0xff] }
 0x9aa   : > { %v2915_v3 = vpop.f32.mrf.mxu0 }
 0x9ab   : > { %v3607_v4 = vadd.f32 %v1696_v2, %v1525_v46  ;;  %v1973_v46 = vld [vmem:[%s3936_s19 + $0x18] sm:$0xff]  ;;  %v3772_v2 = vshrl.u32 %v2320_v59, 7  ;;  %v2801_v3 = vld [vmem:[%s3939_s22] ss:$0 sm:$0xff] }
 0x9ad   : > { %2925 = vmatmul.mubr.msk.f32.vlgmr.msra.gmra.mxu1 %vm1031_vm2, %v3607_v4 }
 0x9ae   : > { %2946 = vmatprep.mubr.msk.f32.mxu1 %vm3170_vm3, %v3168_v0  ;;  %2939 = vmatpush3.msra.mxu1 %v1713_v7 }
 0x9af   : > { %2940 = vmatprep.subr.mxu1 %v3168_v0 }
 0x9b0   : > { %2941 = vmatpush3.msra.mxu1 %v1712_v8  ;;  %v2299_v8 = vld [vmem:[%s3940_s23 + $0x8] sm:$0xff] }
 0x9b1   : > { %2942 = vmatprep.subr.mxu1 %v3168_v0 }
 0x9b2   : > { %2943 = vmatpush3.msra.mxu1 %v1711_v18  ;;  %v2312_v18 = vld [vmem:[%s3940_s23 + $0x70] sm:$0xff] }
 0x9b3   : > { %2944 = vmatprep.subr.mxu1 %v3168_v0 }
 0x9b4   : > { %2945 = vmatpush3.msra.mxu1 %v1710_v19 }
 0x9b5   : > { %2960 = vmatprep.subr.mxu1 %v3168_v0 }
 0xa6d   : > { %v1790_v10 = vpop.f32.mrf.mxu1 }
 0xa6e   : > { %v1791_v11 = vadd.f32 %v2787_v9, %v1790_v10  ;;  %v2298_v10 = vld [vmem:[%s3940_s23] sm:$0xff] }
 0xa6f   : > { %v2926_v12 = vpop.f32.mrf.mxu1 }
 0xa70   : > { %v1794_v13 = vmax.f32 %v1791_v11, 0.0  ;;  %v2330_v11 = vsub.s32 2, %v3772_v2 }
 0xa72   : > { %2936 = vmatmul.mubr.msk.f32.vlgmr.msra.gmra.mxu0 %vm1031_vm2, %v1794_v13 }
 0xa73   : > { %2950 = vmatpush3.msra.mxu0 %v1963_v14  ;;  %2957 = vmatprep.mubr.msk.f32.mxu0 %vm3170_vm3, %v3168_v0  ;;  %v3795_v14 = vld [vmem:[%s3941_s24] sm:$0x1f] }
 0xa74   : > { %2951 = vmatprep.subr.mxu0 %v3168_v0  ;;  %v2331_v19 = vrot.slane %v3795_v14, %v2330_v11 }
 0xa75   : > { %2952 = vmatpush3.msra.mxu0 %v1962_v15 }
 0xa76   : > { %2953 = vmatprep.subr.mxu0 %v3168_v0 }
 0xa77   : > { %2954 = vmatpush3.msra.mxu0 %v1961_v16  ;;  %v2317_v16 = vld [vmem:[%s3940_s23 + $0x98] sm:$0xff] }
 0xa78   : > { %2955 = vmatprep.subr.mxu0 %v3168_v0 }
 0xa79   : > { %2956 = vmatpush3.msra.mxu0 %v1960_v17  ;;  %v2334_v17 = vsub.s32 3, %v3772_v2 }
 0xa7a   : > { %2958 = vmatmul.mubr.msk.f32.vlgmr.msra.gmra.mxu0 %vm1031_vm2, %v3607_v4  ;;  %2971 = vmatprep.subr.mxu0 %v3168_v0 }
 0xa7b   : > { %2979 = vmatprep.mubr.msk.f32.mxu0 %vm3170_vm3, %v3168_v0  ;;  %2972 = vmatpush3.msra.mxu0 %v1973_v46 }
 0xa7c   : > { %2973 = vmatprep.subr.mxu0 %v3168_v0 }
 0xa7d   : > { %2974 = vmatpush3.msra.mxu0 %v1972_v47 }
 0xa7e   : > { %2975 = vmatprep.subr.mxu0 %v3168_v0 }
 0xa7f   : > { %2976 = vmatpush3.msra.mxu0 %v1971_v48 }
 0xa80   : > { %2977 = vmatprep.subr.mxu0 %v3168_v0 }
 0xa81   : > { %2978 = vmatpush3.msra.mxu0 %v1970_v49 }
 0xa82   : > { %2369 = vmatprep.subr.mxu0 %v2314_v50 }
 0xb32   : > { %v1870_v21 = vpop.f32.mrf.mxu0 }
 0xb33   : > { %v1871_v22 = vadd.f32 %v2789_v20, %v1870_v21  ;;  %v2307_v20 = vld [vmem:[%s3940_s23 + $0x48] sm:$0xff]  ;;  %v2335_v21 = vrot.slane %v3795_v14, %v2334_v17 }
 0xb34   : > { %v2937_v23 = vpop.f32.mrf.mxu0 }
 0xb35   : > { %v1874_v24 = vmax.f32 %v1871_v22, 0.0 }
 0xb37   : > { %2947 = vmatmul.mubr.msk.f32.vlgmr.msra.gmra.mxu1 %vm1031_vm2, %v1874_v24  ;;  %v2302_v24 = vld [vmem:[%s3940_s23 + $0x20] sm:$0xff] }
 0xb38   : > { %2961 = vmatpush3.msra.mxu1 %v1968_v25  ;;  %2968 = vmatprep.mubr.msk.f32.mxu1 %vm3170_vm3, %v3168_v0 }
 0xb39   : > { %2962 = vmatprep.subr.mxu1 %v3168_v0 }
 0xb3a   : > { %v2047_v29 = vpop.f32.mrf.mxu0  ;;  %2963 = vmatpush3.msra.mxu1 %v1967_v26 }
 0xb3b   : > { %v2048_v30 = vadd.f32 %v2794_v27, %v2047_v29  ;;  %2964 = vmatprep.subr.mxu1 %v3168_v0 }
 0xb3c   : > { %v2959_v32 = vpop.f32.mrf.mxu0  ;;  %2965 = vmatpush3.msra.mxu1 %v1966_v28 }
 0xb3d   : > { %v2051_v33 = vmax.f32 %v2048_v30, 0.0  ;;  %2966 = vmatprep.subr.mxu1 %v3168_v0 }
 0xb3e   : > { %2967 = vmatpush3.msra.mxu1 %v1965_v31 }
 0xb3f   : > { %2969 = vmatmul.mubr.msk.f32.vlgmr.msra.gmra.mxu1 %vm1031_vm2, %v2051_v33  ;;  %2982 = vmatprep.subr.mxu1 %v3168_v0 }
 0xb40   : > { %2983 = vmatpush3.msra.mxu1 %v2220_v34  ;;  %2990 = vmatprep.mubr.msk.f32.mxu1 %vm3170_vm3, %v3168_v0 }
 0xb41   : > { %2984 = vmatprep.subr.mxu1 %v3168_v0 }
 0xb42   : > { %2985 = vmatpush3.msra.mxu1 %v2219_v35 }
 0xb43   : > { %2986 = vmatprep.subr.mxu1 %v3168_v0 }
 0xb44   : > { %2987 = vmatpush3.msra.mxu1 %v2218_v36 }
 0xb45   : > { %2988 = vmatprep.subr.mxu1 %v3168_v0 }
 0xb46   : > { %2989 = vmatpush3.msra.mxu1 %v2217_v37 }
 0xb47   : > { %2991 = vmatmul.mubr.msk.f32.vlgmr.msra.gmra.mxu1 %vm1031_vm2, %v3607_v4  ;;  %2440 = vmatprep.subr.mxu1 %v2316_v38 }
 0xb48   : > { %2441 = vmatpush1.msra.mxu1 %v2315_v39  ;;  %2480 = vmatprep.mubr.f32.mxu1 %v3168_v0 }
 0xb49   : > { %2442 = vmatprep.subr.mxu1 %v2311_v40 }
 0xb4a   : > { %2443 = vmatpush1.msra.mxu1 %v2310_v41 }
 0xb4b   : > { %2444 = vmatprep.subr.mxu1 %v2306_v42 }
 0xb4c   : > { %2445 = vmatpush1.msra.mxu1 %v2305_v43 }
 0xb4d   : > { %2446 = vmatprep.subr.mxu1 %v2301_v44 }
 0xb4e   : > { %2447 = vmatpush1.msra.mxu1 %v2300_v45 }
 0xb4f   : > { %2804 = vmatmul.mubr.msk.f32.vlgmr.msra.gmra.mxu1 %vm1031_vm2, %v3607_v4 }
 0xbf7   : > { %v1950_v52 = vpop.f32.mrf.mxu1 }
 0xbf8   : > { %v1951_v53 = vadd.f32 %v2791_v51, %v1950_v52 }
 0xbf9   : > { %v2948_v54 = vpop.f32.mrf.mxu1 }
 0xbfa   : > { %v2793_v55 = vmul.f32 -1.442695, %v1951_v53 }
 0xbfc   : > { %3068 = vpow2.f32 %v2793_v55 }
 0xbff   : > { %v2127_v57 = vpop.f32.mrf.mxu1 }
 0xc00   : > { %v2128_v58 = vadd.f32 %v2796_v56, %v2127_v57 }
 0xc01   : > { %v2970_v60 = vpop.f32.mrf.mxu1 }
 0xc02   : > { %v2131_v61 = vmax.f32 %v2128_v58, 0.0 }
 0xc04   : > { %2980 = vmatmul.mubr.msk.f32.vlgmr.msra.gmra.mxu0 %vm1031_vm2, %v2131_v61 }
 0xc05   : > { %2370 = vmatpush1.msra.mxu0 %v2313_v62  ;;  %2409 = vmatprep.mubr.f32.mxu0 %v3168_v0 }
 0xc06   : > { %2371 = vmatprep.subr.mxu0 %v2309_v63 }
 0xc07   : > { %2372 = vmatpush1.msra.mxu0 %v2308_v1  ;;  %v2294_v7 = vpop.f32.mrf.mxu1 }
 0xc08   : > { %v2295_v9 = vadd.f32 %v2801_v3, %v2294_v7  ;;  %2373 = vmatprep.subr.mxu0 %v2304_v5 }
 0xc09   : > { %v3069_v12 = vpop.eup %3068  ;;  %2374 = vmatpush1.msra.mxu0 %v2303_v6  ;;  %v2992_v13 = vpop.f32.mrf.mxu1 }
 0xc0a   : > { %v1957_v15 = vadd.f32 1.0, %v3069_v12  ;;  %2375 = vmatprep.subr.mxu0 %v2299_v8  ;;  %2560 = vst.msk [vmem:[%s3801_s9] sm:$0xff] %vm2559_vm4, %v2295_v9 }
 0xc0b   : > { %2376 = vmatpush1.msra.mxu0 %v2298_v10 }
 0xc0c   : > { %3070 = vrcp.f32 %v1957_v15  ;;  %2803 = vmatmul.mubr.msk.f32.vlgmr.msra.gmra.mxu0 %vm1031_vm2, %v3607_v4  ;;  %2993 = vmatprep.subr.mxu0 %v3168_v0 }
 0xc0d   : > { %2994 = vmatpush3.msra.mxu0 %v2317_v16  ;;  %3001 = vmatprep.mubr.msk.f32.mxu0 %vm3170_vm3, %v3168_v0 }
 0xc0e   : > { %2995 = vmatprep.subr.mxu0 %v3168_v0 }
 0xc0f   : > { %2996 = vmatpush3.msra.mxu0 %v2312_v18  ;;  %v2482_v22 = vpop.f32.mrf.mxu1 }
 0xc10   : > { %v2483_v23 = vadd.f32 %v2482_v22, %v2331_v19  ;;  %2997 = vmatprep.subr.mxu0 %v3168_v0 }
 0xc11   : > { %2998 = vmatpush3.msra.mxu0 %v2307_v20  ;;  %v2484_v25 = vpop.f32.mrf.mxu1 }
 0xc12   : > { %2563 = vst [vmem:[%s3823_s1 + $0x10] sm:$0xff] %v2483_v23  ;;  %v2485_v26 = vadd.f32 %v2484_v25, %v2335_v21  ;;  %2999 = vmatprep.subr.mxu0 %v3168_v0 }
 0xc13   : > { %3000 = vmatpush3.msra.mxu0 %v2302_v24 }
 0xc14   : > { %2564 = vst [vmem:[%s3823_s1 + $0x18] sm:$0xff] %v2485_v26  ;;  %3002 = vmatmul.mubr.msk.f32.vlgmr.msra.gmra.mxu0 %vm1031_vm2, %v3607_v4 }
 0xc19   : > { %v3071_v27 = vpop.eup %3070 }
 0xc1a   : > { %2557 = vst.msk [vmem:[%s870_s0] sm:$0xff] %vm906_vm1, %v3071_v27 }
 0xc1b   : > { %3089 = shalt.err (!%p3086_p3)
}
 0xc1c   : > { %s3090_s9 = scalar_lea.hbm %s2597_s11, 128  ;;  %s3094_s8 = scalar_lea.hbm %s3944_s27, 256 }
 0xc1d   : > { %p3091_p4 = scmp.ne.s32.totalorder %s2597_s11, %s3090_s9  ;;  %p3095_p9 = scmp.lt.s32.totalorder %s2597_s11, %s3944_s27 }
 0xc1e   : > { %p3096_p10 = scmp.lt.s32.totalorder %s3094_s8, %s3090_s9 }
 0xc1f   : > { %p3092_p7 = pnand %p3091_p4, %p3356_p5 }
 0xc20   : > { %p3097_p11 = por %p3096_p10, %p3095_p9 }
 0xc21   : > { %p3093_p8 = pneg %p3092_p7 }
 0xc23   : > { %p3098_p12 = pnand %p3097_p11, %p3093_p8 }
 0xc25   : > { %3101 = shalt.err (!%p3098_p12)
}
 0xc26   : > { %3006 = dma.vmem_to_hbm [thread:$0]  (%p3356_p5), %s2600_s10, 128, %s2597_s11, %s2575_s13   ;;  %v2798_v0 = vld [vmem:[%s3937_s20] ss:$0 sm:$0xff]  ;;  %v2322_v29 = vsub.s32 0, %v3772_v2  ;;  %v2326_v32 = vsub.s32 1, %v3772_v2  ;;  %v2338_v37 = vsub.s32 4, %v3772_v2 }
 0xc27   : > { %s3005_s13 = smul.u32 640, %s3339_s3  ;;  %s2613_s16 = sshll.u32 %s3823_s1, 4  ;;  %s3871_s16 = int_to_ptr.vmem [resolvable:$true] %s2613_s16 }
 0xc28   : > { %v2323_v33 = vrot.slane %v3795_v14, %v2322_v29  ;;  %v2327_v34 = vrot.slane %v3795_v14, %v2326_v32  ;;  %v2339_v40 = vrot.slane %v3795_v14, %v2338_v37  ;;  %s2580_s9 = scalar_lea.sflag [#allocation5], %s3760_s6  ;;  %s3102_s30 = scalar_lea.vmem %s3871_s16, 640 }
 0xc29   : > { %s3869_s7 = scalar_lea.hbm %s3945_s28, %s3005_s13  ;;  %p3103_p13 = scmp.ne.s32.totalorder %s3871_s16, %s3102_s30 }
 0xc2a   : > { %s3172_s3 = smov [#allocation4]  }
 0xc2b   : > { %p3104_p0 = pnand %p3103_p13, %p3356_p5  ;;  %s3106_s0 = sshll.u32 %s3172_s3, 4  ;;  %s3107_s0 = int_to_ptr.vmem [resolvable:$false] %s3106_s0 }
 0xc2c   : > { %s3108_s8 = scalar_lea.vmem %s3107_s0, 1280  ;;  %p3109_p2 = scmp.lt.s32.totalorder %s3871_s16, %s3107_s0 }
 0xc2d   : > { %p3105_p1 = pneg %p3104_p0  ;;  %p3110_p3 = scmp.lt.s32.totalorder %s3108_s8, %s3102_s30 }
 0xc2f   : > { %p3111_p4 = por %p3110_p3, %p3109_p2 }
 0xc31   : > { %p3112_p7 = pnand %p3111_p4, %p3105_p1 }
 0xcc4   : > { %v2207_v4 = vpop.f32.mrf.mxu0 }
 0xcc5   : > { %v2208_v28 = vadd.f32 %v2798_v0, %v2207_v4 }
 0xcc6   : > { %v2981_v30 = vpop.f32.mrf.mxu0 }
 0xcc7   : > { %v2800_v31 = vmul.f32 -1.442695, %v2208_v28 }
 0xcc9   : > { %3072 = vpow2.f32 %v2800_v31 }
 0xccc   : > { %v2411_v35 = vpop.f32.mrf.mxu0 }
 0xccd   : > { %v2412_v36 = vadd.f32 %v2411_v35, %v2323_v33 }
 0xcce   : > { %v2413_v38 = vpop.f32.mrf.mxu0 }
 0xccf   : > { %2561 = vst [vmem:[%s3823_s1] sm:$0xff] %v2412_v36  ;;  %v2414_v39 = vadd.f32 %v2413_v38, %v2327_v34 }
 0xcd1   : > { %2562 = vst [vmem:[%s3823_s1 + $0x8] sm:$0xff] %v2414_v39 }
 0xcd4   : > { %v2553_v41 = vpop.f32.mrf.mxu0 }
 0xcd5   : > { %v2554_v42 = vadd.f32 %v2553_v41, %v2339_v40 }
 0xcd6   : > { %v3073_v43 = vpop.eup %3072  ;;  %v3003_v44 = vpop.f32.mrf.mxu0 }
 0xcd7   : > { %v2214_v45 = vadd.f32 1.0, %v3073_v43  ;;  %2565 = vst [vmem:[%s3823_s1 + $0x20] sm:$0xff] %v2554_v42 }
 0xcd8   : > { %3115 = shalt.err (!%p3112_p7)
}
 0xcd9   : > { %s3116_s1 = scalar_lea.hbm %s3869_s7, 640  ;;  %s3120_s4 = scalar_lea.hbm %s3945_s28, 1280 }
 0xcda   : > { %p3117_p8 = scmp.ne.s32.totalorder %s3869_s7, %s3116_s1  ;;  %p3121_p11 = scmp.lt.s32.totalorder %s3869_s7, %s3945_s28 }
 0xcdb   : > { %p3122_p12 = scmp.lt.s32.totalorder %s3120_s4, %s3116_s1 }
 0xcdc   : > { %p3118_p9 = pnand %p3117_p8, %p3356_p5 }
 0xcdd   : > { %p3123_p13 = por %p3122_p12, %p3121_p11 }
 0xcde   : > { %p3119_p10 = pneg %p3118_p9 }
 0xce0   : > { %p3124_p0 = pnand %p3123_p13, %p3119_p10 }
 0xce2   : > { %3127 = shalt.err (!%p3124_p0)
}
 0xce3   : > { %3007 = dma.vmem_to_hbm [thread:$0]  (%p3356_p5), %s3871_s16, 640, %s3869_s7, %s2580_s9   ;;  %3074 = vrcp.f32 %v2214_v45 }
 0xce4   : > { %s4014_s10 = sld [smem:[#allocation31_spill]] }
 0xcea   : > { %s874_s30 = scalar_lea.vmem %s4014_s10, %s3376_s29 }
 0xcf0   : > { %v3075_v46 = vpop.eup %3074 }
 0xcf1   : > { %2558 = vst.msk [vmem:[%s874_s30] sm:$0xff] %vm906_vm1, %v3075_v46 }
 0xcf2 PF: > { %s4015_s3 = sld [smem:[#allocation10_spill]] }
 0xcf3   : > { %s4016_s0 = sld [smem:[#allocation8_spill]] }
 0xcf8   : > { %p3017_p1 = scmp.ge.s32.totalorder %s4015_s3, 2 }
 0xcf9   : > { %s2639_s1 = sand.u32 1, %s4016_s0  }
 0xcfa   : > { %p3011_p2 = pnand %p3017_p1, %p3360_p6  ;;  %s2640_s2 = scalar_lea.sflag [#allocation3], %s2639_s1 }
 0xcfc   : > { %p3012_p3 = pneg %p3011_p2 }
 0xcfe   : > { %3145 = dma.done.wait (%p3012_p3), %s2640_s2, 128  }
 0xcff   : > { %3147 = vsyncadd (%p3012_p3), %s2640_s2, 4294967168  ;;  %s2649_s16 = scalar_lea.sflag [#allocation5], %s2639_s1 }
 0xd00   : > { %3149 = dma.done.wait (%p3012_p3), %s2649_s16, 640  }
 0xd01   : > { %3151 = vsyncadd (%p3012_p3), %s2649_s16, 4294966656  ;;  %s4018_s30 = sld [smem:[#allocation11_spill]]  ;;  %s4021_s8 = smov %s3158_s5 }
 0xd02   : > { %s4019_s29 = sld [smem:[#allocation9_spill]] }
 0xd03   : > { %s4020_s9 = sld [smem:[#allocation12_spill]] }
 0xd07   : > { %p42_p5 = scmp.ge.s32.totalorder %s4018_s30, 4  }
 0xd08   : > { %s4022_s5 = smov %s4019_s29 }
 0xd09   :  { %44 = sbr.rel (!%p42_p5) target bundleno = 24 (0x18), region = 200 }
 0xd0e   :  { %2654 = vsyncpa [#allocation3], 1 }
 0xd0f   :  { %2656 = vsyncpa [#allocation3 + $0x1], 1 }
 0xd10   :  { %2657 = vsyncpa [#allocation5], 1 }
 0xd11   :  { %2659 = vsyncpa [#allocation5 + $0x1], 1 }

</bundles_post_ra>
